<compile_context>
chip_gen: v7x
topology: tpu7x:2x2x1
jax: 0.10.0
libtpu: 0.0.40
codegen_flags: <defaults>
</compile_context>

<pallas_src>
import functools

import numpy as np
import jax
import jax.numpy as jnp
from jax import lax
from jax.experimental import pallas as pl
from jax.experimental.pallas import tpu as pltpu

# ---------------------------------------------------------------------------
# Configuration (small synthetic shapes consistent with the module defaults).
# ---------------------------------------------------------------------------
INPUT_DIM = 32            # opt.input_dim
RPN_NUM_FILTERS = 64      # opt.rpn_num_filters (default 256, shrunk for demo)
FILTER = 3                # opt.rpn_filter_size
PAD = FILTER // 2
H = W = 16                # feature-map spatial size
HW = H * W
STD = 0.1                 # opt.std (enlarged so values are non-trivial)
ANCHOR_SCALE = 1.0        # opt.anchor_scale
BOX_REG_DECAY = 5e-5      # opt.box_reg_decay
FIELD_CENTERS = (7.5, 7.5, 16.0, 16.0)   # (x0, y0, sx, sy)
IMG_H = IMG_W = 256       # setImageSize(...)

# 'original' anchors, transposed to (2, k): row0 = widths, row1 = heights.
_ANCHORS = jnp.array(
    [[30, 30], [60, 60], [80, 80], [100, 100], [120, 120],
     [30, 45], [60, 90], [80, 120], [100, 150], [120, 180],
     [30, 20], [60, 20], [90, 60], [105, 70], [120, 80]],
    dtype=jnp.float32).T * ANCHOR_SCALE          # (2, 15)
K_ANCH = _ANCHORS.shape[1]                       # num_anchors = 15
KP = 16                                          # anchor axis padded to 16 (sublane aligned)

# Row-group layout of the fused output slab, shape (N_GROUPS*KP, SPAN) where
# SPAN = H*(W+2) and span column j corresponds to image pixel (y=j//(W+2),
# x=j%(W+2)); columns with x >= W are frame garbage and are sliced off in XLA.
G_TRANS = 0     # groups 0..3   tx,ty,tw,th  (bfeats in ReshapeBoxFeatures order)
G_SCORE = 4     # groups 4..5   pos,neg objectness logits
G_BOX = 6       # groups 6..9   xc,yc,w,h    ApplyBoxTransform (unclipped)
G_XYXY = 10     # groups 10..13 x1,y1,x2,y2  clipped corners (densecap clip_boxes)
G_PROB = 14     # group 14      objectness probability
N_GROUPS = 15


# ---------------------------------------------------------------------------
# Fused kernel: 9-tap conv trunk + merged 1x1 heads + act_reg + anchors + box
# transform + clip + objectness.  Everything is (channels-on-sublanes,
# span-columns-on-lanes); every matmul/store is lane-dense.
# ---------------------------------------------------------------------------
def _fused_rpn_kernel(x_ref, wconv_ref, bconv_ref, whead_ref, bhead_ref, ancwh_ref,
                      slab_ref, actreg_ref, *,
                      height, width, x0, y0, sx, sy,
                      w_decay, x_min, y_min, x_max, y_max):
    f = wconv_ref.shape[1]
    wp2 = width + 2
    span = height * wp2             # lane extent of every tile below
    s0 = width + 3                  # flat padded-slab offset of image pixel (0, 0)

    # --- RPN trunk: 3x3 conv as 9 shifted-tap bf16 matmuls, f32 accumulation ---
    # (no im2col HBM expansion: each tap is a static lane slice of the single
    #  zero-padded slab already resident in VMEM)
    acc = jnp.zeros((f, span), jnp.float32)
    for kh in range(FILTER):
        for kw in range(FILTER):
            d = (kh - 1) * wp2 + (kw - 1)
            tap = x_ref[:, s0 + d:s0 + d + span]                  # (Cin, span) bf16
            acc = acc + jnp.dot(wconv_ref[kh * FILTER + kw], tap,
                                preferred_element_type=jnp.float32)
    feats = jnp.maximum(acc + bconv_ref[...], 0.0)                # (F, span) f32

    # --- fused 1x1 heads: box regression (4k) + objectness (2k) in ONE matmul ---
    heads = jnp.dot(whead_ref[...], feats.astype(jnp.bfloat16),
                    preferred_element_type=jnp.float32) + bhead_ref[...]
    trans = heads[:4 * KP, :]                    # tx,ty,tw,th row groups
    scores = heads[4 * KP:6 * KP, :]             # pos,neg row groups
    slab_ref[G_TRANS * KP:(G_TRANS + 4) * KP, :] = trans
    slab_ref[G_SCORE * KP:(G_SCORE + 2) * KP, :] = scores

    # --- span column -> image (x, y) + interior mask (VPU iota, no DMA) ---
    col = lax.broadcasted_iota(jnp.int32, (KP, span), 1).astype(jnp.float32)
    y_img = jnp.floor((col + 0.5) * jnp.float32(1.0 / wp2))
    x_img = col - y_img * jnp.float32(wp2)
    interior = jnp.where(x_img < jnp.float32(width), 1.0, 0.0)    # (KP, span)

    # act_reg = 0.5 * w * ||bfeats||_2^2 over interior pixels.
    # (padded anchor rows of whead/bhead are exact zeros, so they contribute 0)
    sq = 0.0
    for g in range(4):
        t = trans[g * KP:(g + 1) * KP, :]
        sq = sq + jnp.sum(t * t * interior)
    actreg_ref[...] = (0.5 * w_decay * sq).reshape(1, 1)

    # --- MakeAnchors (in-kernel) + ApplyBoxTransform ---
    xa = x0 + sx * x_img
    ya = y0 + sy * y_img
    wa = jnp.broadcast_to(ancwh_ref[:, 0:1], (KP, span))
    ha = jnp.broadcast_to(ancwh_ref[:, 1:2], (KP, span))
    tx = trans[0 * KP:1 * KP, :]
    ty = trans[1 * KP:2 * KP, :]
    tw = trans[2 * KP:3 * KP, :]
    th = trans[3 * KP:4 * KP, :]
    xc = xa + tx * wa
    yc = ya + ty * ha
    bw = wa * jnp.exp(tw)   # matches torch exactly; no clamp (could inf for huge logits)
    bh = ha * jnp.exp(th)
    slab_ref[(G_BOX + 0) * KP:(G_BOX + 1) * KP, :] = xc
    slab_ref[(G_BOX + 1) * KP:(G_BOX + 2) * KP, :] = yc
    slab_ref[(G_BOX + 2) * KP:(G_BOX + 3) * KP, :] = bw
    slab_ref[(G_BOX + 3) * KP:(G_BOX + 4) * KP, :] = bh

    # --- box_utils.clip_boxes('xcycwh'), densecap clamp convention ---
    x1 = xc - 0.5 * (bw - 1.0)
    y1 = yc - 0.5 * (bh - 1.0)
    x2 = x1 + bw - 1.0
    y2 = y1 + bh - 1.0
    slab_ref[(G_XYXY + 0) * KP:(G_XYXY + 1) * KP, :] = jnp.clip(x1, x_min, x_max - 1.0)
    slab_ref[(G_XYXY + 1) * KP:(G_XYXY + 2) * KP, :] = jnp.clip(y1, y_min, y_max - 1.0)
    slab_ref[(G_XYXY + 2) * KP:(G_XYXY + 3) * KP, :] = jnp.clip(x2, x_min + 1.0, x_max)
    slab_ref[(G_XYXY + 3) * KP:(G_XYXY + 4) * KP, :] = jnp.clip(y2, y_min + 1.0, y_max)

    # --- objectness: exp(pos)/(exp(pos)+exp(neg)) == 1/(1+exp(neg-pos)) ---
    # Exact reciprocal (not approx) so NMS ranking matches the torch sigmoid.
    pos = scores[:KP, :]
    neg = scores[KP:2 * KP, :]
    slab_ref[G_PROB * KP:(G_PROB + 1) * KP, :] = pl.reciprocal(
        1.0 + jnp.exp(neg - pos), approx=False)


# ---------------------------------------------------------------------------
# Plain-JAX glue (weight repacking, padded slab, slab -> module layout).
# ---------------------------------------------------------------------------
def _pack_weights(wconv, bconv, wbox, bbox, wrpn, brpn, f, cin):
    """Repack PyTorch OIHW / OIxx weights for the transposed fused kernel."""
    k, kp = K_ANCH, KP
    # conv taps: (F, Cin, 3, 3) -> (9, F, Cin) bf16, tap index t = kh*3 + kw.
    wconv_t = jnp.transpose(wconv, (2, 3, 0, 1)).reshape(FILTER * FILTER, f, cin)
    wconv_t = wconv_t.astype(jnp.bfloat16)
    bconv_t = bconv.reshape(f, 1)                      # bias stays f32

    def pad_anchor_axis(arr):    # pad anchor axis (axis 1) k -> kp with EXACT zeros
        pad_width = [(0, 0)] * arr.ndim
        pad_width[1] = (0, kp - k)
        return jnp.pad(arr, pad_width)

    # bfeats channel a*4+d -> head row d*KP + a ; scores channel a*2+s -> 4*KP + s*KP + a
    wbox_g = jnp.transpose(wbox[:, :, 0, 0].reshape(k, 4, f), (1, 0, 2))   # (4, k, F)
    wrpn_g = jnp.transpose(wrpn[:, :, 0, 0].reshape(k, 2, f), (1, 0, 2))   # (2, k, F)
    bbox_g = jnp.transpose(bbox.reshape(k, 4), (1, 0))                     # (4, k)
    brpn_g = jnp.transpose(brpn.reshape(k, 2), (1, 0))                     # (2, k)
    # pad-with-zeros THEN cast: zero rows stay exactly zero in bf16.
    whead_t = jnp.concatenate([pad_anchor_axis(wbox_g).reshape(4 * kp, f),
                               pad_anchor_axis(wrpn_g).reshape(2 * kp, f)],
                              axis=0).astype(jnp.bfloat16)
    bhead_t = jnp.concatenate([pad_anchor_axis(bbox_g).reshape(4 * kp, 1),
                               pad_anchor_axis(brpn_g).reshape(2 * kp, 1)], axis=0)
    return wconv_t, bconv_t, whead_t, bhead_t


def _make_anchors_m4(height, width, anchors_wh, x0, y0, sx, sy):
    """MakeAnchors in (M = k*H*W, 4) module layout (matches the in-kernel iota math)."""
    k = K_ANCH
    xs = x0 + sx * jnp.arange(width, dtype=jnp.float32)
    ys = y0 + sy * jnp.arange(height, dtype=jnp.float32)
    xg = jnp.broadcast_to(xs[None, None, :], (k, height, width))
    yg = jnp.broadcast_to(ys[None, :, None], (k, height, width))
    wg = jnp.broadcast_to(anchors_wh[0][:, None, None], (k, height, width))
    hg = jnp.broadcast_to(anchors_wh[1][:, None, None], (k, height, width))
    return jnp.stack([xg, yg, wg, hg], axis=-1).reshape(k * height * width, 4)


def _slab_to_md(slab, g0, d):
    """Extract d consecutive KP-row groups of the span slab -> (M = k*H*W, d)."""
    blk = slab[g0 * KP:(g0 + d) * KP, :].reshape(d, KP, H, W + 2)
    blk = blk[:, :K_ANCH, :, :W]                  # drop pad anchors + frame columns
    return jnp.transpose(blk, (1, 2, 3, 0)).reshape(K_ANCH * HW, d)


def rpn_localization_fused(x_nchw, wconv, bconv, wbox, bbox, wrpn, brpn,
                           image_height, image_width):
    """Run the single fused Pallas kernel; returns the span-layout slab + act_reg."""
    n, cin, height, width = x_nchw.shape
    assert n == 1, 'Only minibatches with N = 1 are supported'
    f = wconv.shape[0]
    wp2 = width + 2
    span = height * wp2

    # Zero-padded bf16 input slab: 1 frame row/col each side plus one extra bottom
    # row so every tap slice [s0+d, s0+d+span) (s0=W+3, d in [-(W+3), W+3]) stays
    # in bounds.  This is the ONLY activation input DMA (no im2col expansion).
    xpad = jnp.pad(x_nchw[0].astype(jnp.bfloat16), ((0, 0), (1, 2), (1, 1)))
    x_slab = xpad.reshape(cin, (height + 3) * wp2)

    wconv_t, bconv_t, whead_t, bhead_t = _pack_weights(
        wconv, bconv, wbox, bbox, wrpn, brpn, f, cin)
    ancwh = jnp.pad(_ANCHORS.T, ((0, KP - K_ANCH), (0, 0)))        # (KP, 2) f32

    x0, y0, sx, sy = FIELD_CENTERS
    kern = functools.partial(
        _fused_rpn_kernel,
        height=height, width=width, x0=x0, y0=y0, sx=sx, sy=sy,
        w_decay=BOX_REG_DECAY,
        x_min=1.0, y_min=1.0, x_max=float(image_width), y_max=float(image_height))

    vmem = pl.BlockSpec(memory_space=pltpu.MemorySpace.VMEM)
    slab, act_reg = pl.pallas_call(
        kern,
        out_shape=(jax.ShapeDtypeStruct((N_GROUPS * KP, span), jnp.float32),
                   jax.ShapeDtypeStruct((1, 1), jnp.float32)),
        in_specs=[vmem] * 6,
        out_specs=(vmem, vmem),
        compiler_params=pltpu.CompilerParams(vmem_limit_bytes=32 * 1024 * 1024),
    )(x_slab, wconv_t, bconv_t, whead_t, bhead_t, ancwh)
    return slab, act_reg[0, 0]


def localization_layer_forward_test(x_nchw, wconv, bconv, wbox, bbox, wrpn, brpn,
                                    image_height, image_width):
    """LocalizationLayer._forward_test up to the (pre-NMS) proposal scoring.

    Returns:
      rpn_out      = (boxes, anchors, trans, scores)    each (1, M, D)
      act_reg      = 0.5 * box_reg_decay * ||bfeats||^2
      boxes_scores = (M, 5) clipped x1y1x2y2 + objectness prob (NMS input)
      boxes_clip   = (M, 4) clipped xcycwh boxes (what NMS would index)
      valid        = (M,)  bool clip validity mask (clamp_data selector)
    """
    slab, act_reg = rpn_localization_fused(
        x_nchw, wconv, bconv, wbox, bbox, wrpn, brpn, image_height, image_width)
    x0, y0, sx, sy = FIELD_CENTERS
    anchors_m4 = _make_anchors_m4(H, W, _ANCHORS, x0, y0, sx, sy)

    # NOTE: consumers that accept the lane-dense slab layout should use `slab`
    # directly; these (M, d) repacks are only for module-layout parity.
    trans_m4 = _slab_to_md(slab, G_TRANS, 4)
    scores_m2 = _slab_to_md(slab, G_SCORE, 2)
    boxes_m4 = _slab_to_md(slab, G_BOX, 4)
    xyxy_m4 = _slab_to_md(slab, G_XYXY, 4)
    probs = _slab_to_md(slab, G_PROB, 1)[:, 0]

    # Clipped xcycwh + validity derived from the clipped corners with a few cheap
    # XLA adds (kept OUT of the kernel to trim the output slab writeback).
    x1c, y1c, x2c, y2c = (xyxy_m4[:, i] for i in range(4))
    boxes_clip_m4 = jnp.stack([0.5 * (x1c + x2c), 0.5 * (y1c + y2c),
                               x2c - x1c + 1.0, y2c - y1c + 1.0], axis=1)
    valid = (x2c > x1c) & (y2c > y1c)

    rpn_out = (boxes_m4[None], anchors_m4[None], trans_m4[None], scores_m2[None])
    boxes_scores = jnp.concatenate([xyxy_m4, probs[:, None]], axis=1)
    # TODO(synk): box_utils.nms + clamp_data dynamic-shape filtering (and the
    # train-path sampler / ROI pooling / losses) are not expressible with static
    # shapes and are left to downstream consumers of the slab.
    return rpn_out, act_reg, boxes_scores, boxes_clip_m4, valid


# ---------------------------------------------------------------------------
# Pure-JAX reference (verification only).  Operands quantized to bf16 exactly
# like the kernel's MXU path; accumulation in f32 (HIGHEST precision).
# ---------------------------------------------------------------------------
def _reference_rpn(x, wconv, bconv, wbox, bbox, wrpn, brpn):
    dn = ('NCHW', 'OIHW', 'NCHW')
    hp = lax.Precision.HIGHEST
    q = lambda a: a.astype(jnp.bfloat16).astype(jnp.float32)
    feats = lax.conv_general_dilated(q(x), q(wconv), (1, 1), ((PAD, PAD), (PAD, PAD)),
                                     dimension_numbers=dn, precision=hp)
    feats = jax.nn.relu(feats + bconv[None, :, None, None])
    featsq = q(feats)                      # kernel recasts feats to bf16 before the heads
    bfeats = lax.conv_general_dilated(featsq, q(wbox), (1, 1), 'VALID',
                                      dimension_numbers=dn, precision=hp)
    bfeats = bfeats + bbox[None, :, None, None]
    scores = lax.conv_general_dilated(featsq, q(wrpn), (1, 1), 'VALID',
                                      dimension_numbers=dn, precision=hp)
    scores = scores + brpn[None, :, None, None]
    act_reg = 0.5 * BOX_REG_DECAY * jnp.sum(bfeats ** 2)
    return bfeats, scores, act_reg


def _ref_reshape_box_features(x_chw, k, d):
    """(k*d, H, W) with channel = a*d + dd  ->  (k*H*W, d)."""
    _, h, w = x_chw.shape
    return jnp.transpose(x_chw.reshape(k, d, h, w), (0, 2, 3, 1)).reshape(k * h * w, d)


if __name__ == "__main__":
    key = jax.random.PRNGKey(0)
    kx, k1, k2, k3 = jax.random.split(key, 4)

    # Input CNN features, NCHW like PyTorch.
    x = jax.random.normal(kx, (1, INPUT_DIM, H, W), jnp.float32)

    # Deterministic synthetic parameters (normal(0, std) weights, zero biases).
    # NOTE: the module's default zero_box_conv=True would zero wbox; we use
    # random values so the kernel path is non-trivial (synthetic weights).
    wconv = STD * jax.random.normal(k1, (RPN_NUM_FILTERS, INPUT_DIM, FILTER, FILTER), jnp.float32)
    bconv = jnp.zeros((RPN_NUM_FILTERS,), jnp.float32)
    wbox = STD * jax.random.normal(k2, (4 * K_ANCH, RPN_NUM_FILTERS, 1, 1), jnp.float32)
    bbox = jnp.zeros((4 * K_ANCH,), jnp.float32)
    wrpn = STD * jax.random.normal(k3, (2 * K_ANCH, RPN_NUM_FILTERS, 1, 1), jnp.float32)
    brpn = jnp.zeros((2 * K_ANCH,), jnp.float32)

    out = localization_layer_forward_test(x, wconv, bconv, wbox, bbox, wrpn, brpn,
                                          image_height=IMG_H, image_width=IMG_W)
    out = jax.block_until_ready(out)
    (boxes, anchors, trans, scores), act_reg, boxes_scores, boxes_clip, valid = out

    # --- conv / heads / act_reg vs XLA conv reference (bf16 operands, f32 acc) ---
    bf_ref, sc_ref, ar_ref = _reference_rpn(x, wconv, bconv, wbox, bbox, wrpn, brpn)
    trans_ref = _ref_reshape_box_features(bf_ref[0], K_ANCH, 4)
    scores_ref = _ref_reshape_box_features(sc_ref[0], K_ANCH, 2)
    np.testing.assert_allclose(np.asarray(trans[0]), np.asarray(trans_ref),
                               rtol=5e-3, atol=5e-3)
    np.testing.assert_allclose(np.asarray(scores[0]), np.asarray(scores_ref),
                               rtol=5e-3, atol=5e-3)
    np.testing.assert_allclose(float(act_reg), float(ar_ref), rtol=5e-3, atol=1e-8)

    # --- ApplyBoxTransform reference (from the kernel's own anchors/trans) ---
    xa, ya, wa, ha = [anchors[0][:, i] for i in range(4)]
    tx, ty, tw, th = [trans[0][:, i] for i in range(4)]
    boxes_ref = jnp.stack([xa + tx * wa, ya + ty * ha,
                           wa * jnp.exp(tw), ha * jnp.exp(th)], axis=1)
    np.testing.assert_allclose(np.asarray(boxes[0]), np.asarray(boxes_ref),
                               rtol=1e-4, atol=1e-4)

    # --- clip_boxes reference (densecap clamp convention) ---
    xc, yc, bw, bh = [boxes_ref[:, i] for i in range(4)]
    x1 = xc - 0.5 * (bw - 1.0); y1 = yc - 0.5 * (bh - 1.0)
    x2 = x1 + bw - 1.0;         y2 = y1 + bh - 1.0
    x1c = jnp.clip(x1, 1.0, IMG_W - 1.0); y1c = jnp.clip(y1, 1.0, IMG_H - 1.0)
    x2c = jnp.clip(x2, 2.0, float(IMG_W)); y2c = jnp.clip(y2, 2.0, float(IMG_H))
    xyxy_ref = jnp.stack([x1c, y1c, x2c, y2c], axis=1)
    boxes_clip_ref = jnp.stack([0.5 * (x1c + x2c), 0.5 * (y1c + y2c),
                                x2c - x1c + 1.0, y2c - y1c + 1.0], axis=1)
    valid_ref = (x2c > x1c) & (y2c > y1c)
    np.testing.assert_allclose(np.asarray(boxes_scores[:, :4]), np.asarray(xyxy_ref),
                               rtol=1e-5, atol=1e-3)
    np.testing.assert_allclose(np.asarray(boxes_clip), np.asarray(boxes_clip_ref),
                               rtol=1e-5, atol=1e-3)
    assert bool(jnp.all(valid == valid_ref))

    # --- objectness probability (exact reciprocal -> tight tolerance) ---
    probs_ref = jax.nn.sigmoid(scores[0][:, 0] - scores[0][:, 1])
    np.testing.assert_allclose(np.asarray(boxes_scores[:, 4]), np.asarray(probs_ref),
                               rtol=1e-4, atol=1e-4)

    M = K_ANCH * H * W
    assert boxes.shape == (1, M, 4) and anchors.shape == (1, M, 4)
    assert trans.shape == (1, M, 4) and scores.shape == (1, M, 2)
    assert boxes_scores.shape == (M, 5) and boxes_clip.shape == (M, 4)
    assert valid.shape == (M,)
    assert bool(jnp.all(jnp.isfinite(boxes_scores)))

    print("KERNEL_OK")
</pallas_src>

<mosaic_0001>
module attributes {stable_mosaic.version = 11 : i64} {
  func.func @_fused_rpn_kernel(%arg0: memref<32x342xbf16, #tpu.memory_space<vmem>>, %arg1: memref<9x64x32xbf16, #tpu.memory_space<vmem>>, %arg2: memref<64x1xf32, #tpu.memory_space<vmem>>, %arg3: memref<96x64xbf16, #tpu.memory_space<vmem>>, %arg4: memref<96x1xf32, #tpu.memory_space<vmem>>, %arg5: memref<16x2xf32, #tpu.memory_space<vmem>>, %arg6: memref<240x288xf32, #tpu.memory_space<vmem>>, %arg7: memref<1x1xf32, #tpu.memory_space<vmem>>) attributes {dimension_semantics = [], scalar_prefetch = 0 : i64, scratch_operands = 0 : i64, tpu.core_type = #tpu.core_type<tc>} {
    %cst = arith.constant 0.000000e+00 : f32
    %0 = vector.broadcast %cst : f32 to vector<64x288xf32>
    %c0 = arith.constant 0 : index
    %c0_0 = arith.constant 0 : index
    %1 = vector.load %arg0[%c0, %c0_0] : memref<32x342xbf16, #tpu.memory_space<vmem>>, vector<32x288xbf16>
    %c0_1 = arith.constant 0 : index
    %c0_2 = arith.constant 0 : index
    %c0_3 = arith.constant 0 : index
    %2 = vector.load %arg1[%c0_1, %c0_2, %c0_3] : memref<9x64x32xbf16, #tpu.memory_space<vmem>>, vector<1x64x32xbf16>
    %3 = vector.shape_cast %2 : vector<1x64x32xbf16> to vector<64x32xbf16>
    %cst_4 = arith.constant dense<0.000000e+00> : vector<64x288xf32>
    %4 = tpu.matmul %3, %1, %cst_4 {dimension_numbers = #tpu.dot_dimension_numbers<[1], [0], [0], [1], [0, 0, 1, 1], [], []>} : vector<64x32xbf16>, vector<32x288xbf16>, vector<64x288xf32> -> vector<64x288xf32>
    %5 = arith.addf %0, %4 : vector<64x288xf32>
    %c0_5 = arith.constant 0 : index
    %c1 = arith.constant 1 : index
    %6 = vector.load %arg0[%c0_5, %c1] : memref<32x342xbf16, #tpu.memory_space<vmem>>, vector<32x288xbf16>
    %c1_6 = arith.constant 1 : index
    %c0_7 = arith.constant 0 : index
    %c0_8 = arith.constant 0 : index
    %7 = vector.load %arg1[%c1_6, %c0_7, %c0_8] : memref<9x64x32xbf16, #tpu.memory_space<vmem>>, vector<1x64x32xbf16>
    %8 = vector.shape_cast %7 : vector<1x64x32xbf16> to vector<64x32xbf16>
    %cst_9 = arith.constant dense<0.000000e+00> : vector<64x288xf32>
    %9 = tpu.matmul %8, %6, %cst_9 {dimension_numbers = #tpu.dot_dimension_numbers<[1], [0], [0], [1], [0, 0, 1, 1], [], []>} : vector<64x32xbf16>, vector<32x288xbf16>, vector<64x288xf32> -> vector<64x288xf32>
    %10 = arith.addf %5, %9 : vector<64x288xf32>
    %c0_10 = arith.constant 0 : index
    %c2 = arith.constant 2 : index
    %11 = vector.load %arg0[%c0_10, %c2] : memref<32x342xbf16, #tpu.memory_space<vmem>>, vector<32x288xbf16>
    %c2_11 = arith.constant 2 : index
    %c0_12 = arith.constant 0 : index
    %c0_13 = arith.constant 0 : index
    %12 = vector.load %arg1[%c2_11, %c0_12, %c0_13] : memref<9x64x32xbf16, #tpu.memory_space<vmem>>, vector<1x64x32xbf16>
    %13 = vector.shape_cast %12 : vector<1x64x32xbf16> to vector<64x32xbf16>
    %cst_14 = arith.constant dense<0.000000e+00> : vector<64x288xf32>
    %14 = tpu.matmul %13, %11, %cst_14 {dimension_numbers = #tpu.dot_dimension_numbers<[1], [0], [0], [1], [0, 0, 1, 1], [], []>} : vector<64x32xbf16>, vector<32x288xbf16>, vector<64x288xf32> -> vector<64x288xf32>
    %15 = arith.addf %10, %14 : vector<64x288xf32>
    %c0_15 = arith.constant 0 : index
    %c18 = arith.constant 18 : index
    %16 = vector.load %arg0[%c0_15, %c18] : memref<32x342xbf16, #tpu.memory_space<vmem>>, vector<32x288xbf16>
    %c3 = arith.constant 3 : index
    %c0_16 = arith.constant 0 : index
    %c0_17 = arith.constant 0 : index
    %17 = vector.load %arg1[%c3, %c0_16, %c0_17] : memref<9x64x32xbf16, #tpu.memory_space<vmem>>, vector<1x64x32xbf16>
    %18 = vector.shape_cast %17 : vector<1x64x32xbf16> to vector<64x32xbf16>
    %cst_18 = arith.constant dense<0.000000e+00> : vector<64x288xf32>
    %19 = tpu.matmul %18, %16, %cst_18 {dimension_numbers = #tpu.dot_dimension_numbers<[1], [0], [0], [1], [0, 0, 1, 1], [], []>} : vector<64x32xbf16>, vector<32x288xbf16>, vector<64x288xf32> -> vector<64x288xf32>
    %20 = arith.addf %15, %19 : vector<64x288xf32>
    %c0_19 = arith.constant 0 : index
    %c19 = arith.constant 19 : index
    %21 = vector.load %arg0[%c0_19, %c19] : memref<32x342xbf16, #tpu.memory_space<vmem>>, vector<32x288xbf16>
    %c4 = arith.constant 4 : index
    %c0_20 = arith.constant 0 : index
    %c0_21 = arith.constant 0 : index
    %22 = vector.load %arg1[%c4, %c0_20, %c0_21] : memref<9x64x32xbf16, #tpu.memory_space<vmem>>, vector<1x64x32xbf16>
    %23 = vector.shape_cast %22 : vector<1x64x32xbf16> to vector<64x32xbf16>
    %cst_22 = arith.constant dense<0.000000e+00> : vector<64x288xf32>
    %24 = tpu.matmul %23, %21, %cst_22 {dimension_numbers = #tpu.dot_dimension_numbers<[1], [0], [0], [1], [0, 0, 1, 1], [], []>} : vector<64x32xbf16>, vector<32x288xbf16>, vector<64x288xf32> -> vector<64x288xf32>
    %25 = arith.addf %20, %24 : vector<64x288xf32>
    %c0_23 = arith.constant 0 : index
    %c20 = arith.constant 20 : index
    %26 = vector.load %arg0[%c0_23, %c20] : memref<32x342xbf16, #tpu.memory_space<vmem>>, vector<32x288xbf16>
    %c5 = arith.constant 5 : index
    %c0_24 = arith.constant 0 : index
    %c0_25 = arith.constant 0 : index
    %27 = vector.load %arg1[%c5, %c0_24, %c0_25] : memref<9x64x32xbf16, #tpu.memory_space<vmem>>, vector<1x64x32xbf16>
    %28 = vector.shape_cast %27 : vector<1x64x32xbf16> to vector<64x32xbf16>
    %cst_26 = arith.constant dense<0.000000e+00> : vector<64x288xf32>
    %29 = tpu.matmul %28, %26, %cst_26 {dimension_numbers = #tpu.dot_dimension_numbers<[1], [0], [0], [1], [0, 0, 1, 1], [], []>} : vector<64x32xbf16>, vector<32x288xbf16>, vector<64x288xf32> -> vector<64x288xf32>
    %30 = arith.addf %25, %29 : vector<64x288xf32>
    %c0_27 = arith.constant 0 : index
    %c36 = arith.constant 36 : index
    %31 = vector.load %arg0[%c0_27, %c36] : memref<32x342xbf16, #tpu.memory_space<vmem>>, vector<32x288xbf16>
    %c6 = arith.constant 6 : index
    %c0_28 = arith.constant 0 : index
    %c0_29 = arith.constant 0 : index
    %32 = vector.load %arg1[%c6, %c0_28, %c0_29] : memref<9x64x32xbf16, #tpu.memory_space<vmem>>, vector<1x64x32xbf16>
    %33 = vector.shape_cast %32 : vector<1x64x32xbf16> to vector<64x32xbf16>
    %cst_30 = arith.constant dense<0.000000e+00> : vector<64x288xf32>
    %34 = tpu.matmul %33, %31, %cst_30 {dimension_numbers = #tpu.dot_dimension_numbers<[1], [0], [0], [1], [0, 0, 1, 1], [], []>} : vector<64x32xbf16>, vector<32x288xbf16>, vector<64x288xf32> -> vector<64x288xf32>
    %35 = arith.addf %30, %34 : vector<64x288xf32>
    %c0_31 = arith.constant 0 : index
    %c37 = arith.constant 37 : index
    %36 = vector.load %arg0[%c0_31, %c37] : memref<32x342xbf16, #tpu.memory_space<vmem>>, vector<32x288xbf16>
    %c7 = arith.constant 7 : index
    %c0_32 = arith.constant 0 : index
    %c0_33 = arith.constant 0 : index
    %37 = vector.load %arg1[%c7, %c0_32, %c0_33] : memref<9x64x32xbf16, #tpu.memory_space<vmem>>, vector<1x64x32xbf16>
    %38 = vector.shape_cast %37 : vector<1x64x32xbf16> to vector<64x32xbf16>
    %cst_34 = arith.constant dense<0.000000e+00> : vector<64x288xf32>
    %39 = tpu.matmul %38, %36, %cst_34 {dimension_numbers = #tpu.dot_dimension_numbers<[1], [0], [0], [1], [0, 0, 1, 1], [], []>} : vector<64x32xbf16>, vector<32x288xbf16>, vector<64x288xf32> -> vector<64x288xf32>
    %40 = arith.addf %35, %39 : vector<64x288xf32>
    %c0_35 = arith.constant 0 : index
    %c38 = arith.constant 38 : index
    %41 = vector.load %arg0[%c0_35, %c38] : memref<32x342xbf16, #tpu.memory_space<vmem>>, vector<32x288xbf16>
    %c8 = arith.constant 8 : index
    %c0_36 = arith.constant 0 : index
    %c0_37 = arith.constant 0 : index
    %42 = vector.load %arg1[%c8, %c0_36, %c0_37] : memref<9x64x32xbf16, #tpu.memory_space<vmem>>, vector<1x64x32xbf16>
    %43 = vector.shape_cast %42 : vector<1x64x32xbf16> to vector<64x32xbf16>
    %cst_38 = arith.constant dense<0.000000e+00> : vector<64x288xf32>
    %44 = tpu.matmul %43, %41, %cst_38 {dimension_numbers = #tpu.dot_dimension_numbers<[1], [0], [0], [1], [0, 0, 1, 1], [], []>} : vector<64x32xbf16>, vector<32x288xbf16>, vector<64x288xf32> -> vector<64x288xf32>
    %45 = arith.addf %40, %44 : vector<64x288xf32>
    %c0_39 = arith.constant 0 : index
    %c0_40 = arith.constant 0 : index
    %46 = vector.load %arg2[%c0_39, %c0_40] : memref<64x1xf32, #tpu.memory_space<vmem>>, vector<64x1xf32>
    %47 = vector.broadcast %46 : vector<64x1xf32> to vector<64x288xf32>
    %48 = arith.addf %45, %47 : vector<64x288xf32>
    %cst_41 = arith.constant 0.000000e+00 : f32
    %49 = vector.broadcast %cst_41 : f32 to vector<64x288xf32>
    %50 = arith.maximumf %48, %49 : vector<64x288xf32>
    %c0_42 = arith.constant 0 : index
    %c0_43 = arith.constant 0 : index
    %51 = vector.load %arg3[%c0_42, %c0_43] : memref<96x64xbf16, #tpu.memory_space<vmem>>, vector<96x64xbf16>
    %52 = arith.truncf %50 : vector<64x288xf32> to vector<64x288xbf16>
    %cst_44 = arith.constant dense<0.000000e+00> : vector<96x288xf32>
    %53 = tpu.matmul %51, %52, %cst_44 {dimension_numbers = #tpu.dot_dimension_numbers<[1], [0], [0], [1], [0, 0, 1, 1], [], []>} : vector<96x64xbf16>, vector<64x288xbf16>, vector<96x288xf32> -> vector<96x288xf32>
    %c0_45 = arith.constant 0 : index
    %c0_46 = arith.constant 0 : index
    %54 = vector.load %arg4[%c0_45, %c0_46] : memref<96x1xf32, #tpu.memory_space<vmem>>, vector<96x1xf32>
    %55 = vector.broadcast %54 : vector<96x1xf32> to vector<96x288xf32>
    %56 = arith.addf %53, %55 : vector<96x288xf32>
    %57 = vector.extract_strided_slice %56 {offsets = [0, 0], sizes = [64, 288], strides = [1, 1]} : vector<96x288xf32> to vector<64x288xf32>
    %58 = vector.extract_strided_slice %56 {offsets = [64, 0], sizes = [32, 288], strides = [1, 1]} : vector<96x288xf32> to vector<32x288xf32>
    %c0_47 = arith.constant 0 : index
    %c0_48 = arith.constant 0 : index
    %59 = vector.load %arg6[%c0_47, %c0_48] : memref<240x288xf32, #tpu.memory_space<vmem>>, vector<64x288xf32>
    tpu.vector_store %arg6[%c0_47, %c0_48], %57 {strides = array<i32>} : memref<240x288xf32, #tpu.memory_space<vmem>>, vector<64x288xf32>,
    %c64 = arith.constant 64 : index
    %c0_49 = arith.constant 0 : index
    %60 = vector.load %arg6[%c64, %c0_49] : memref<240x288xf32, #tpu.memory_space<vmem>>, vector<32x288xf32>
    tpu.vector_store %arg6[%c64, %c0_49], %58 {strides = array<i32>} : memref<240x288xf32, #tpu.memory_space<vmem>>, vector<32x288xf32>,
    %61 = tpu.iota {dimensions = array<i32: 1>} : vector<16x288xi32>
    %62 = arith.sitofp %61 : vector<16x288xi32> to vector<16x288xf32>
    %cst_50 = arith.constant 5.000000e-01 : f32
    %63 = vector.broadcast %cst_50 : f32 to vector<16x288xf32>
    %64 = arith.addf %62, %63 : vector<16x288xf32>
    %cst_51 = arith.constant 0.055555556 : f32
    %65 = vector.broadcast %cst_51 : f32 to vector<16x288xf32>
    %66 = arith.mulf %64, %65 : vector<16x288xf32>
    %67 = math.floor %66 : vector<16x288xf32>
    %cst_52 = arith.constant 1.800000e+01 : f32
    %68 = vector.broadcast %cst_52 : f32 to vector<16x288xf32>
    %69 = arith.mulf %67, %68 : vector<16x288xf32>
    %70 = arith.subf %62, %69 : vector<16x288xf32>
    %cst_53 = arith.constant 1.600000e+01 : f32
    %71 = vector.broadcast %cst_53 : f32 to vector<16x288xf32>
    %72 = arith.cmpf olt, %70, %71 : vector<16x288xf32>
    %cst_54 = arith.constant 1.000000e+00 : f32
    %cst_55 = arith.constant 0.000000e+00 : f32
    %73 = vector.broadcast %cst_54 : f32 to vector<16x288xf32>
    %74 = vector.broadcast %cst_55 : f32 to vector<16x288xf32>
    %75 = arith.select %72, %73, %74 : vector<16x288xi1>, vector<16x288xf32>
    %76 = vector.extract_strided_slice %57 {offsets = [0, 0], sizes = [16, 288], strides = [1, 1]} : vector<64x288xf32> to vector<16x288xf32>
    %77 = arith.mulf %76, %76 : vector<16x288xf32>
    %78 = arith.mulf %77, %75 : vector<16x288xf32>
    %79 = vector.shape_cast %78 : vector<16x288xf32> to vector<1x16x288xf32>
    %cst_56 = arith.constant dense<0.000000e+00> : vector<1xf32>
    %80 = vector.multi_reduction <add>, %79, %cst_56 [1, 2] : vector<1x16x288xf32> to vector<1xf32>
    %81 = vector.shape_cast %80 : vector<1xf32> to vector<1x1x1xf32>
    %82 = vector.extract %81[0, 0, 0] : f32 from vector<1x1x1xf32>
    %cst_57 = arith.constant 0.000000e+00 : f32
    %83 = arith.addf %cst_57, %82 : f32
    %84 = vector.extract_strided_slice %57 {offsets = [16, 0], sizes = [16, 288], strides = [1, 1]} : vector<64x288xf32> to vector<16x288xf32>
    %85 = arith.mulf %84, %84 : vector<16x288xf32>
    %86 = arith.mulf %85, %75 : vector<16x288xf32>
    %87 = vector.shape_cast %86 : vector<16x288xf32> to vector<1x16x288xf32>
    %cst_58 = arith.constant dense<0.000000e+00> : vector<1xf32>
    %88 = vector.multi_reduction <add>, %87, %cst_58 [1, 2] : vector<1x16x288xf32> to vector<1xf32>
    %89 = vector.shape_cast %88 : vector<1xf32> to vector<1x1x1xf32>
    %90 = vector.extract %89[0, 0, 0] : f32 from vector<1x1x1xf32>
    %91 = arith.addf %83, %90 : f32
    %92 = vector.extract_strided_slice %57 {offsets = [32, 0], sizes = [16, 288], strides = [1, 1]} : vector<64x288xf32> to vector<16x288xf32>
    %93 = arith.mulf %92, %92 : vector<16x288xf32>
    %94 = arith.mulf %93, %75 : vector<16x288xf32>
    %95 = vector.shape_cast %94 : vector<16x288xf32> to vector<1x16x288xf32>
    %cst_59 = arith.constant dense<0.000000e+00> : vector<1xf32>
    %96 = vector.multi_reduction <add>, %95, %cst_59 [1, 2] : vector<1x16x288xf32> to vector<1xf32>
    %97 = vector.shape_cast %96 : vector<1xf32> to vector<1x1x1xf32>
    %98 = vector.extract %97[0, 0, 0] : f32 from vector<1x1x1xf32>
    %99 = arith.addf %91, %98 : f32
    %100 = vector.extract_strided_slice %57 {offsets = [48, 0], sizes = [16, 288], strides = [1, 1]} : vector<64x288xf32> to vector<16x288xf32>
    %101 = arith.mulf %100, %100 : vector<16x288xf32>
    %102 = arith.mulf %101, %75 : vector<16x288xf32>
    %103 = vector.shape_cast %102 : vector<16x288xf32> to vector<1x16x288xf32>
    %cst_60 = arith.constant dense<0.000000e+00> : vector<1xf32>
    %104 = vector.multi_reduction <add>, %103, %cst_60 [1, 2] : vector<1x16x288xf32> to vector<1xf32>
    %105 = vector.shape_cast %104 : vector<1xf32> to vector<1x1x1xf32>
    %106 = vector.extract %105[0, 0, 0] : f32 from vector<1x1x1xf32>
    %107 = arith.addf %99, %106 : f32
    %cst_61 = arith.constant 2.500000e-05 : f32
    %108 = arith.mulf %cst_61, %107 : f32
    %109 = vector.broadcast %108 : f32 to vector<1x1xf32>
    %c0_62 = arith.constant 0 : index
    %c0_63 = arith.constant 0 : index
    %110 = vector.load %arg7[%c0_62, %c0_63] : memref<1x1xf32, #tpu.memory_space<vmem>>, vector<1x1xf32>
    tpu.vector_store %arg7[%c0_62, %c0_63], %109 {strides = array<i32>} : memref<1x1xf32, #tpu.memory_space<vmem>>, vector<1x1xf32>,
    %cst_64 = arith.constant 1.600000e+01 : f32
    %111 = vector.broadcast %cst_64 : f32 to vector<16x288xf32>
    %112 = arith.mulf %111, %70 : vector<16x288xf32>
    %cst_65 = arith.constant 7.500000e+00 : f32
    %113 = vector.broadcast %cst_65 : f32 to vector<16x288xf32>
    %114 = arith.addf %113, %112 : vector<16x288xf32>
    %cst_66 = arith.constant 1.600000e+01 : f32
    %115 = vector.broadcast %cst_66 : f32 to vector<16x288xf32>
    %116 = arith.mulf %115, %67 : vector<16x288xf32>
    %cst_67 = arith.constant 7.500000e+00 : f32
    %117 = vector.broadcast %cst_67 : f32 to vector<16x288xf32>
    %118 = arith.addf %117, %116 : vector<16x288xf32>
    %c0_68 = arith.constant 0 : index
    %c0_69 = arith.constant 0 : index
    %119 = vector.load %arg5[%c0_68, %c0_69] : memref<16x2xf32, #tpu.memory_space<vmem>>, vector<16x1xf32>
    %120 = vector.shape_cast %119 : vector<16x1xf32> to vector<16x1xf32>
    %121 = vector.broadcast %120 : vector<16x1xf32> to vector<16x288xf32>
    %c0_70 = arith.constant 0 : index
    %c1_71 = arith.constant 1 : index
    %122 = vector.load %arg5[%c0_70, %c1_71] : memref<16x2xf32, #tpu.memory_space<vmem>>, vector<16x1xf32>
    %123 = vector.shape_cast %122 : vector<16x1xf32> to vector<16x1xf32>
    %124 = vector.broadcast %123 : vector<16x1xf32> to vector<16x288xf32>
    %125 = vector.extract_strided_slice %57 {offsets = [0, 0], sizes = [16, 288], strides = [1, 1]} : vector<64x288xf32> to vector<16x288xf32>
    %126 = vector.extract_strided_slice %57 {offsets = [16, 0], sizes = [16, 288], strides = [1, 1]} : vector<64x288xf32> to vector<16x288xf32>
    %127 = vector.extract_strided_slice %57 {offsets = [32, 0], sizes = [16, 288], strides = [1, 1]} : vector<64x288xf32> to vector<16x288xf32>
    %128 = vector.extract_strided_slice %57 {offsets = [48, 0], sizes = [16, 288], strides = [1, 1]} : vector<64x288xf32> to vector<16x288xf32>
    %129 = arith.mulf %125, %121 : vector<16x288xf32>
    %130 = arith.addf %114, %129 : vector<16x288xf32>
    %131 = arith.mulf %126, %124 : vector<16x288xf32>
    %132 = arith.addf %118, %131 : vector<16x288xf32>
    %133 = math.exp %127 : vector<16x288xf32>
    %134 = arith.mulf %121, %133 : vector<16x288xf32>
    %135 = math.exp %128 : vector<16x288xf32>
    %136 = arith.mulf %124, %135 : vector<16x288xf32>
    %c96 = arith.constant 96 : index
    %c0_72 = arith.constant 0 : index
    %137 = vector.load %arg6[%c96, %c0_72] : memref<240x288xf32, #tpu.memory_space<vmem>>, vector<16x288xf32>
    tpu.vector_store %arg6[%c96, %c0_72], %130 {strides = array<i32>} : memref<240x288xf32, #tpu.memory_space<vmem>>, vector<16x288xf32>,
    %c112 = arith.constant 112 : index
    %c0_73 = arith.constant 0 : index
    %138 = vector.load %arg6[%c112, %c0_73] : memref<240x288xf32, #tpu.memory_space<vmem>>, vector<16x288xf32>
    tpu.vector_store %arg6[%c112, %c0_73], %132 {strides = array<i32>} : memref<240x288xf32, #tpu.memory_space<vmem>>, vector<16x288xf32>,
    %c128 = arith.constant 128 : index
    %c0_74 = arith.constant 0 : index
    %139 = vector.load %arg6[%c128, %c0_74] : memref<240x288xf32, #tpu.memory_space<vmem>>, vector<16x288xf32>
    tpu.vector_store %arg6[%c128, %c0_74], %134 {strides = array<i32>} : memref<240x288xf32, #tpu.memory_space<vmem>>, vector<16x288xf32>,
    %c144 = arith.constant 144 : index
    %c0_75 = arith.constant 0 : index
    %140 = vector.load %arg6[%c144, %c0_75] : memref<240x288xf32, #tpu.memory_space<vmem>>, vector<16x288xf32>
    tpu.vector_store %arg6[%c144, %c0_75], %136 {strides = array<i32>} : memref<240x288xf32, #tpu.memory_space<vmem>>, vector<16x288xf32>,
    %cst_76 = arith.constant 1.000000e+00 : f32
    %141 = vector.broadcast %cst_76 : f32 to vector<16x288xf32>
    %142 = arith.subf %134, %141 : vector<16x288xf32>
    %cst_77 = arith.constant 5.000000e-01 : f32
    %143 = vector.broadcast %cst_77 : f32 to vector<16x288xf32>
    %144 = arith.mulf %143, %142 : vector<16x288xf32>
    %145 = arith.subf %130, %144 : vector<16x288xf32>
    %cst_78 = arith.constant 1.000000e+00 : f32
    %146 = vector.broadcast %cst_78 : f32 to vector<16x288xf32>
    %147 = arith.subf %136, %146 : vector<16x288xf32>
    %cst_79 = arith.constant 5.000000e-01 : f32
    %148 = vector.broadcast %cst_79 : f32 to vector<16x288xf32>
    %149 = arith.mulf %148, %147 : vector<16x288xf32>
    %150 = arith.subf %132, %149 : vector<16x288xf32>
    %151 = arith.addf %145, %134 : vector<16x288xf32>
    %cst_80 = arith.constant 1.000000e+00 : f32
    %152 = vector.broadcast %cst_80 : f32 to vector<16x288xf32>
    %153 = arith.subf %151, %152 : vector<16x288xf32>
    %154 = arith.addf %150, %136 : vector<16x288xf32>
    %cst_81 = arith.constant 1.000000e+00 : f32
    %155 = vector.broadcast %cst_81 : f32 to vector<16x288xf32>
    %156 = arith.subf %154, %155 : vector<16x288xf32>
    %cst_82 = arith.constant 1.000000e+00 : f32
    %cst_83 = arith.constant 2.550000e+02 : f32
    %157 = vector.broadcast %cst_82 : f32 to vector<16x288xf32>
    %158 = arith.maximumf %157, %145 : vector<16x288xf32>
    %159 = vector.broadcast %cst_83 : f32 to vector<16x288xf32>
    %160 = arith.minimumf %159, %158 : vector<16x288xf32>
    %c160 = arith.constant 160 : index
    %c0_84 = arith.constant 0 : index
    %161 = vector.load %arg6[%c160, %c0_84] : memref<240x288xf32, #tpu.memory_space<vmem>>, vector<16x288xf32>
    tpu.vector_store %arg6[%c160, %c0_84], %160 {strides = array<i32>} : memref<240x288xf32, #tpu.memory_space<vmem>>, vector<16x288xf32>,
    %cst_85 = arith.constant 1.000000e+00 : f32
    %cst_86 = arith.constant 2.550000e+02 : f32
    %162 = vector.broadcast %cst_85 : f32 to vector<16x288xf32>
    %163 = arith.maximumf %162, %150 : vector<16x288xf32>
    %164 = vector.broadcast %cst_86 : f32 to vector<16x288xf32>
    %165 = arith.minimumf %164, %163 : vector<16x288xf32>
    %c176 = arith.constant 176 : index
    %c0_87 = arith.constant 0 : index
    %166 = vector.load %arg6[%c176, %c0_87] : memref<240x288xf32, #tpu.memory_space<vmem>>, vector<16x288xf32>
    tpu.vector_store %arg6[%c176, %c0_87], %165 {strides = array<i32>} : memref<240x288xf32, #tpu.memory_space<vmem>>, vector<16x288xf32>,
    %cst_88 = arith.constant 2.000000e+00 : f32
    %cst_89 = arith.constant 2.560000e+02 : f32
    %167 = vector.broadcast %cst_88 : f32 to vector<16x288xf32>
    %168 = arith.maximumf %167, %153 : vector<16x288xf32>
    %169 = vector.broadcast %cst_89 : f32 to vector<16x288xf32>
    %170 = arith.minimumf %169, %168 : vector<16x288xf32>
    %c192 = arith.constant 192 : index
    %c0_90 = arith.constant 0 : index
    %171 = vector.load %arg6[%c192, %c0_90] : memref<240x288xf32, #tpu.memory_space<vmem>>, vector<16x288xf32>
    tpu.vector_store %arg6[%c192, %c0_90], %170 {strides = array<i32>} : memref<240x288xf32, #tpu.memory_space<vmem>>, vector<16x288xf32>,
    %cst_91 = arith.constant 2.000000e+00 : f32
    %cst_92 = arith.constant 2.560000e+02 : f32
    %172 = vector.broadcast %cst_91 : f32 to vector<16x288xf32>
    %173 = arith.maximumf %172, %156 : vector<16x288xf32>
    %174 = vector.broadcast %cst_92 : f32 to vector<16x288xf32>
    %175 = arith.minimumf %174, %173 : vector<16x288xf32>
    %c208 = arith.constant 208 : index
    %c0_93 = arith.constant 0 : index
    %176 = vector.load %arg6[%c208, %c0_93] : memref<240x288xf32, #tpu.memory_space<vmem>>, vector<16x288xf32>
    tpu.vector_store %arg6[%c208, %c0_93], %175 {strides = array<i32>} : memref<240x288xf32, #tpu.memory_space<vmem>>, vector<16x288xf32>,
    %177 = vector.extract_strided_slice %58 {offsets = [0, 0], sizes = [16, 288], strides = [1, 1]} : vector<32x288xf32> to vector<16x288xf32>
    %178 = vector.extract_strided_slice %58 {offsets = [16, 0], sizes = [16, 288], strides = [1, 1]} : vector<32x288xf32> to vector<16x288xf32>
    %179 = arith.subf %178, %177 : vector<16x288xf32>
    %180 = math.exp %179 : vector<16x288xf32>
    %cst_94 = arith.constant 1.000000e+00 : f32
    %181 = vector.broadcast %cst_94 : f32 to vector<16x288xf32>
    %182 = arith.addf %181, %180 : vector<16x288xf32>
    %183 = tpu.reciprocal %182 : vector<16x288xf32> -> vector<16x288xf32>
    %c224 = arith.constant 224 : index
    %c0_95 = arith.constant 0 : index
    %184 = vector.load %arg6[%c224, %c0_95] : memref<240x288xf32, #tpu.memory_space<vmem>>, vector<16x288xf32>
    tpu.vector_store %arg6[%c224, %c0_95], %183 {strides = array<i32>} : memref<240x288xf32, #tpu.memory_space<vmem>>, vector<16x288xf32>,
    return
  }
}

</mosaic_0001>

<bundles_post_ra>
// kernel: tpu_custom_call.1
= control target key start
LH: loop header
LB: loop body
LE: loop exit
PB: predicated region body
PF: predicated region fallthrough
CT: control target
= control target key end

     0   :  { %s3681_s28 = smov 126   ;;  %v3682_v6 = vmov 0   ;;  %vm121_vm0 = vcmask 261120   ;;  %s3683_s17 = smov 110   ;;  %s5053_s0 = inlined_call_operand.vmem [shape: bf16[32,342], index: 0, kind: input, shape index: {}]   ;;  %s5054_s1 = inlined_call_operand.vmem [shape: bf16[9,64,32], index: 1, kind: input, shape index: {}]   ;;  %s5055_s2 = inlined_call_operand.vmem [shape: f32[64,1], index: 2, kind: input, shape index: {}]   ;;  %s5056_s3 = inlined_call_operand.vmem [shape: bf16[96,64], index: 3, kind: input, shape index: {}]   ;;  %s5057_s4 = inlined_call_operand.vmem [shape: f32[96,1], index: 4, kind: input, shape index: {}]   ;;  %s5058_s5 = inlined_call_operand.vmem [shape: f32[16,2], index: 5, kind: input, shape index: {}]   ;;  %s5059_s6 = inlined_call_operand.vmem [shape: f32[240,288], index: 6, kind: output, shape index: {0}]   ;;  %s5060_s7 = inlined_call_operand.hbm [shape: f32[1,1], index: 7, kind: output, shape index: {1}]  }
   0x1   :  { %v3736_v0 = vld [vmem:[%s5053_s0 + $0x4] ss:$12 sps:$4 sm:$0xff]   ;;  %v3741_v1 = vld [vmem:[%s5053_s0] ss:$12 sps:$4 sm:$0xff]   ;;  %v3747_v2 = vld [vmem:[%s5053_s0 + $0x8] ss:$12 sps:$4 sm:$0xff]   ;;  %342 = vmatprep.mubr.bf16.mxu0 %v3682_v6  ;;  %166 = vmatprep.mubr.bf16.mxu1 %v3682_v6 }
   0x2   :  { %479 = vrot.lane.b32.xlu0 %v3736_v0, %s3681_s28  ;;  %310 = vmatprep.subr.bf16.mxu0 %v3736_v0  ;;  %v3754_v3 = vld [vmem:[%s5053_s0 + $0x1c] ss:$12 sps:$4 sm:$0xff]   ;;  %v3760_v4 = vld [vmem:[%s5053_s0 + $0x20] ss:$12 sps:$4 sm:$0xff]   ;;  %v3765_v5 = vld [vmem:[%s5053_s0 + $0x18] ss:$12 sps:$4 sm:$0xff]  }
   0x3   :  { %477 = vrot.lane.b32.xlu1 %v3741_v1, %s3681_s28  ;;  %311 = vmatpush1.bf16.msra.mxu0 %v3741_v1  ;;  %v3773_v7 = vld [vmem:[%s5054_s1] sm:$0xff]   ;;  %v3788_v8 = vld [vmem:[%s5054_s1 + $0x8] sm:$0xff]   ;;  %v3800_v9 = vld [vmem:[%s5054_s1 + $0x10] sm:$0xff]   ;;  %s3684_s20 = smov 109  }
   0x4   :  { %312 = vmatprep.subr.bf16.mxu0 %v3754_v3  ;;  %3555 = vset.pattern.permute.xlu0 %v3682_v6  ;;  %v3812_v10 = vld [vmem:[%s5054_s1 + $0x18] sm:$0xff]  }
   0x5   :  { %3556 = vset.pattern.permute.xlu1 %v3682_v6 }
   0x6   :  { %481 = vrot.lane.b32.xlu0 %v3747_v2, %s3681_s28 }
   0x7   :  { %485 = vrot.lane.b32.xlu1 %v3754_v3, %s3681_s28  ;;  %313 = vmatpush1.bf16.msra.mxu0 %v3765_v5 }
   0xa   :  { %487 = vrot.lane.b32.xlu0 %v3760_v4, %s3681_s28  ;;  %2961 = vmatmul.mubr.msk.bf16.vlgmr.msra.gmra.mrb[0].mxu0 %vm121_vm0, %v3773_v7 }
   0xb   :  { %483 = vrot.lane.b32.xlu1 %v3765_v5, %s3681_s28  ;;  %352 = vmatprep.mubr.bf16.mxu0 %v3682_v6 }
   0xe   :  { %705 = vrot.lane.b32.xlu0 %v3736_v0, %s3683_s17 }
   0xf   :  { %707 = vrot.lane.b32.xlu1 %v3747_v2, %s3683_s17 }
  0x12   :  { %703 = vrot.lane.b32.xlu0 %v3741_v1, %s3683_s17  ;;  %2962 = vmatmul.mubr.msk.bf16.gmra.mrb[4].mxu0 %vm121_vm0, %v3788_v8 }
  0x13   :  { %711 = vrot.lane.b32.xlu1 %v3754_v3, %s3683_s17  ;;  %362 = vmatprep.mubr.bf16.mxu0 %v3682_v6 }
  0x16   :  { %713 = vrot.lane.b32.xlu0 %v3760_v4, %s3683_s17 }
  0x17   :  { %709 = vrot.lane.b32.xlu1 %v3765_v5, %s3683_s17 }
  0x1a   :  { %931 = vrot.lane.b32.xlu0 %v3736_v0, %s3684_s20  ;;  %2963 = vmatmul.mubr.msk.bf16.gmra.mrb[8].mxu0 %vm121_vm0, %v3800_v9 }
  0x1b   :  { %933 = vrot.lane.b32.xlu1 %v3747_v2, %s3684_s20  ;;  %372 = vmatprep.mubr.bf16.mxu0 %v3682_v6 }
  0x1e   :  { %929 = vrot.lane.b32.xlu0 %v3741_v1, %s3684_s20 }
  0x1f   :  { %937 = vrot.lane.b32.xlu1 %v3754_v3, %s3684_s20 }
  0x22   :  { %939 = vrot.lane.b32.xlu0 %v3760_v4, %s3684_s20  ;;  %2964 = vmatmul.mubr.msk.bf16.gmra.mrb[12].mxu0 %vm121_vm0, %v3812_v10 }
  0x23   :  { %935 = vrot.lane.b32.xlu1 %v3765_v5, %s3684_s20  ;;  %544 = vmatprep.mubr.bf16.mxu0 %v3682_v6 }
  0x24   :  { %13 = vsyncpa [#allocation3], 0  ;;  %s3685_s23 = smov 127   ;;  %s3686_s24 = smov 108   ;;  %vm489_vm1 = vcmask 1031168   ;;  %v3860_v21 = vld [vmem:[%s5054_s1 + $0x40] sm:$0xff]  }
  0x25   :  { %s3687_s25 = smov 92   ;;  %s3688_s26 = smov 91   ;;  %vm715_vm2 = vcmask 900096   ;;  %v3873_v28 = vld [vmem:[%s5054_s1 + $0x48] sm:$0xff]   ;;  %vm941_vm3 = vcmask 891904   ;;  %v3888_v35 = vld [vmem:[%s5054_s1 + $0x50] sm:$0xff]  }
  0x26   :  { %100 = vrot.lane.b32.xlu0 %v3736_v0, %s3685_s23  ;;  %s3689_s27 = smov 90   ;;  %v3900_v41 = vld [vmem:[%s5054_s1 + $0x58] sm:$0xff]   ;;  %vm110_vm4 = vcmask 1039360   ;;  %v3910_v48 = vld [vmem:[%s5054_s1 + $0x60] sm:$0xff]   ;;  %vm1167_vm5 = vcmask 883712   ;;  %v3927_v58 = vld [vmem:[%s5054_s1 + $0x68] sm:$0xff]  }
  0x27   :  { %102 = vrot.lane.b32.xlu1 %v3747_v2, %s3685_s23  ;;  %v3577_v61 = vld [vmem:[%s5054_s1 + $0x20] sm:$0xff]   ;;  %v3940_v62 = vld [vmem:[%s5054_s1 + $0x70] sm:$0xff]   ;;  %v3579_v63 = vld [vmem:[%s5054_s1 + $0x28] sm:$0xff]   ;;  %vm1393_vm6 = vcmask 752640   ;;  %vm1619_vm7 = vcmask 744448   ;;  %vm1845_vm8 = vcmask 736256  }
  0x28   :  { %vm2252_vm9 = vcmask 523264   ;;  %vm2627_vm13 = vcmask 0  }
  0x2a   :  { %98 = vrot.lane.b32.xlu0 %v3741_v1, %s3685_s23 }
  0x2b   :  { %1157 = vrot.lane.b32.xlu1 %v3736_v0, %s3686_s24 }
  0x2e   :  { %1159 = vrot.lane.b32.xlu0 %v3747_v2, %s3686_s24 }
  0x2f   :  { %1155 = vrot.lane.b32.xlu1 %v3741_v1, %s3686_s24 }
  0x32   :  { %106 = vrot.lane.b32.xlu0 %v3754_v3, %s3685_s23 }
  0x33   :  { %108 = vrot.lane.b32.xlu1 %v3760_v4, %s3685_s23 }
  0x36   :  { %104 = vrot.lane.b32.xlu0 %v3765_v5, %s3685_s23 }
  0x37   :  { %1163 = vrot.lane.b32.xlu1 %v3754_v3, %s3686_s24 }
  0x3a   :  { %1165 = vrot.lane.b32.xlu0 %v3760_v4, %s3686_s24 }
  0x3b   :  { %1161 = vrot.lane.b32.xlu1 %v3765_v5, %s3686_s24 }
  0x3e   :  { %1383 = vrot.lane.b32.xlu0 %v3736_v0, %s3687_s25 }
  0x3f   :  { %1385 = vrot.lane.b32.xlu1 %v3747_v2, %s3687_s25 }
  0x42   :  { %1381 = vrot.lane.b32.xlu0 %v3741_v1, %s3687_s25 }
  0x43   :  { %1389 = vrot.lane.b32.xlu1 %v3754_v3, %s3687_s25 }
  0x46   :  { %1391 = vrot.lane.b32.xlu0 %v3760_v4, %s3687_s25 }
  0x47   :  { %1387 = vrot.lane.b32.xlu1 %v3765_v5, %s3687_s25 }
  0x4a   :  { %1609 = vrot.lane.b32.xlu0 %v3736_v0, %s3688_s26 }
  0x4b   :  { %1611 = vrot.lane.b32.xlu1 %v3747_v2, %s3688_s26 }
  0x4e   :  { %1607 = vrot.lane.b32.xlu0 %v3741_v1, %s3688_s26 }
  0x4f   :  { %1615 = vrot.lane.b32.xlu1 %v3754_v3, %s3688_s26 }
  0x52   :  { %1617 = vrot.lane.b32.xlu0 %v3760_v4, %s3688_s26 }
  0x53   :  { %1613 = vrot.lane.b32.xlu1 %v3765_v5, %s3688_s26 }
  0x56   :  { %1835 = vrot.lane.b32.xlu0 %v3736_v0, %s3689_s27  ;;  %v3954_v0 = vld [vmem:[%s5054_s1 + $0x78] sm:$0xff]  }
  0x57   :  { %1837 = vrot.lane.b32.xlu1 %v3747_v2, %s3689_s27 }
  0x5a   :  { %1833 = vrot.lane.b32.xlu0 %v3741_v1, %s3689_s27  ;;  %v3581_v1 = vld [vmem:[%s5054_s1 + $0x30] sm:$0xff]  }
  0x5b   :  { %1841 = vrot.lane.b32.xlu1 %v3754_v3, %s3689_s27 }
  0x5e   :  { %1843 = vrot.lane.b32.xlu0 %v3760_v4, %s3689_s27 }
  0x5f   :  { %1839 = vrot.lane.b32.xlu1 %v3765_v5, %s3689_s27  ;;  %v3967_v5 = vld [vmem:[%s5054_s1 + $0x80] sm:$0xff]  }
  0x74   :  { %v480_v11 = vpop.permute.xlu0 %479 }
  0x75   :  { %v478_v12 = vpop.permute.xlu1 %477 }
  0x76   :  { %v490_v16 = vsel %vm489_vm1, %v478_v12, %v480_v11 }
  0x78   :  { %v3851_v13 = vpop.permute.xlu0 %481 }
  0x79   :  { %v486_v14 = vpop.permute.xlu1 %485  ;;  %v491_v15 = vsel %vm489_vm1, %v480_v11, %v3851_v13 }
  0x7a   :  { %512 = vmatprep.subr.bf16.mxu0 %v491_v15  ;;  %v3583_v15 = vld [vmem:[%s5054_s1 + $0x38] sm:$0xff]  }
  0x7b   :  { %513 = vmatpush1.bf16.msra.mxu0 %v490_v16 }
  0x7c   :  { %v3854_v17 = vpop.permute.xlu0 %487 }
  0x7d   :  { %v484_v18 = vpop.permute.xlu1 %483  ;;  %v493_v19 = vsel %vm489_vm1, %v486_v14, %v3854_v17 }
  0x7e   :  { %v492_v20 = vsel %vm489_vm1, %v484_v18, %v486_v14  ;;  %514 = vmatprep.subr.bf16.mxu0 %v493_v19 }
  0x7f   :  { %515 = vmatpush1.bf16.msra.mxu0 %v492_v20 }
  0x80   :  { %v706_v22 = vpop.permute.xlu0 %705 }
  0x81   :  { %v3862_v23 = vpop.permute.xlu1 %707 }
  0x82   :  { %2981 = vmatmul.mubr.msk.bf16.vlgmr.msra.gmra.mrb[0].mxu0 %vm121_vm0, %v3860_v21  ;;  %v717_v24 = vsel %vm715_vm2, %v706_v22, %v3862_v23 }
  0x83   :  { %554 = vmatprep.mubr.bf16.mxu0 %v3682_v6  ;;  %738 = vmatprep.subr.bf16.mxu0 %v717_v24  ;;  %v3990_v24 = vld [vmem:[%s5054_s1 + $0x88] sm:$0xff]  }
  0x84   :  { %v704_v25 = vpop.permute.xlu0 %703 }
  0x85   :  { %v716_v26 = vsel %vm715_vm2, %v704_v25, %v706_v22  ;;  %v712_v27 = vpop.permute.xlu1 %711  ;;  %v4001_v25 = vld [vmem:[%s5054_s1 + $0x90] sm:$0xff]  }
  0x86   :  { %739 = vmatpush1.bf16.msra.mxu0 %v716_v26 }
  0x88   :  { %v3875_v29 = vpop.permute.xlu0 %713 }
  0x89   :  { %v710_v30 = vpop.permute.xlu1 %709  ;;  %v719_v31 = vsel %vm715_vm2, %v712_v27, %v3875_v29 }
  0x8a   :  { %2982 = vmatmul.mubr.msk.bf16.gmra.mrb[4].mxu0 %vm121_vm0, %v3873_v28  ;;  %v718_v32 = vsel %vm715_vm2, %v710_v30, %v712_v27  ;;  %740 = vmatprep.subr.bf16.mxu0 %v719_v31  ;;  %v2031_v27 = vld [vmem:[%s5055_s2 + $0x8] sm:$0xff]  ;;  %v2032_v31 = vld [vmem:[%s5055_s2 + $0x10] sm:$0xff] }
  0x8b   :  { %564 = vmatprep.mubr.bf16.mxu0 %v3682_v6  ;;  %741 = vmatpush1.bf16.msra.mxu0 %v718_v32  ;;  %v4039_v32 = vld [vmem:[%s5054_s1 + $0xa0] sm:$0xff]  }
  0x8c   :  { %v932_v33 = vpop.permute.xlu0 %931  ;;  %2045 = vperm.xlu1 %3556, %v2031_v27  }
  0x8d   :  { %v3883_v34 = vpop.permute.xlu1 %933 }
  0x8e   :  { %v943_v36 = vsel %vm941_vm3, %v932_v33, %v3883_v34 }
  0x8f   :  { %964 = vmatprep.subr.bf16.mxu0 %v943_v36 }
  0x90   :  { %v930_v37 = vpop.permute.xlu0 %929  ;;  %2050 = vperm.xlu1 %3556, %v2032_v31  }
  0x91   :  { %v938_v38 = vpop.permute.xlu1 %937  ;;  %v942_v49 = vsel %vm941_vm3, %v930_v37, %v932_v33  ;;  %v2035_v37 = vld [vmem:[%s5055_s2 + $0x28] sm:$0xff] }
  0x92   :  { %2983 = vmatmul.mubr.msk.bf16.gmra.mrb[8].mxu0 %vm121_vm0, %v3888_v35 }
  0x93   :  { %574 = vmatprep.mubr.bf16.mxu0 %v3682_v6 }
  0x94   :  { %v3895_v39 = vpop.permute.xlu0 %939 }
  0x95   :  { %v936_v40 = vpop.permute.xlu1 %935  ;;  %v945_v52 = vsel %vm941_vm3, %v938_v38, %v3895_v39 }
  0x96   :  { %v944_v53 = vsel %vm941_vm3, %v936_v40, %v938_v38 }
  0x98   :  { %v101_v42 = vpop.permute.xlu0 %100 }
  0x99   :  { %v103_v43 = vpop.permute.xlu1 %102 }
  0x9a   :  { %2984 = vmatmul.mubr.msk.bf16.gmra.mrb[12].mxu0 %vm121_vm0, %v3900_v41  ;;  %v112_v44 = vsel %vm110_vm4, %v101_v42, %v103_v43 }
  0x9b   :  { %770 = vmatprep.mubr.bf16.mxu0 %v3682_v6  ;;  %134 = vmatprep.subr.bf16.mxu1 %v112_v44 }
  0x9c   :  { %v99_v45 = vpop.permute.xlu0 %98 }
  0x9d   :  { %v1158_v46 = vpop.permute.xlu1 %1157  ;;  %v111_v47 = vsel %vm110_vm4, %v99_v45, %v101_v42  ;;  %v4068_v42 = vld [vmem:[%s5054_s1 + $0xa8] sm:$0xff]  }
  0x9e   :  { %135 = vmatpush1.bf16.msra.mxu1 %v111_v47 }
  0xa0   :  { %v3913_v50 = vpop.permute.xlu0 %1159 }
  0xa1   :  { %v1156_v51 = vpop.permute.xlu1 %1155  ;;  %v1169_v56 = vsel %vm1167_vm5, %v1158_v46, %v3913_v50 }
  0xa2   :  { %3001 = vmatmul.mubr.msk.bf16.vlgmr.msra.gmra.mrb[0].mxu0 %vm121_vm0, %v3910_v48  ;;  %v1168_v12 = vsel %vm1167_vm5, %v1156_v51, %v1158_v46  ;;  %v2037_v46 = vld [vmem:[%s5055_s2 + $0x38] sm:$0xff] }
  0xa3   :  { %780 = vmatprep.mubr.bf16.mxu0 %v3682_v6  ;;  %965 = vmatpush1.bf16.msra.mxu0 %v942_v49  ;;  %v3592_v49 = vld [vmem:[%s5054_s1 + $0xc8] sm:$0xff]  }
  0xa4   :  { %v107_v54 = vpop.permute.xlu0 %106  ;;  %966 = vmatprep.subr.bf16.mxu0 %v945_v52  ;;  %v2152_v52 = vld [vmem:[%s5057_s4 + $0x10] sm:$0xff] }
  0xa5   :  { %v109_v55 = vpop.permute.xlu1 %108 }
  0xa6   :  { %v114_v57 = vsel %vm110_vm4, %v107_v54, %v109_v55 }
  0xa7   :  { %136 = vmatprep.subr.bf16.mxu1 %v114_v57  ;;  %967 = vmatpush1.bf16.msra.mxu0 %v944_v53  ;;  %v2150_v53 = vld [vmem:[%s5057_s4] sm:$0xff]  ;;  %v2156_v57 = vld [vmem:[%s5057_s4 + $0x30] sm:$0xff] }
  0xa8   :  { %v105_v59 = vpop.permute.xlu0 %104  ;;  %1190 = vmatprep.subr.bf16.mxu0 %v1169_v56  ;;  %v3593_v56 = vld [vmem:[%s5054_s1 + $0xd0] sm:$0xff]  }
  0xa9   :  { %v113_v60 = vsel %vm110_vm4, %v105_v59, %v107_v54  ;;  %v1164_v3 = vpop.permute.xlu1 %1163  ;;  %v2151_v54 = vld [vmem:[%s5057_s4 + $0x8] sm:$0xff] }
  0xaa   :  { %137 = vmatpush1.bf16.msra.mxu1 %v113_v60  ;;  %3002 = vmatmul.mubr.msk.bf16.gmra.mrb[4].mxu0 %vm121_vm0, %v3927_v58  ;;  %v2155_v59 = vld [vmem:[%s5057_s4 + $0x28] sm:$0xff]  ;;  %v3594_v60 = vld [vmem:[%s5054_s1 + $0xd8] sm:$0xff]  }
  0xab   :  { %790 = vmatprep.mubr.bf16.mxu0 %v3682_v6  ;;  %3215 = vmatprep.subr.bf16.mxu1 %v103_v43 }
  0xac   :  { %v3970_v11 = vpop.permute.xlu0 %1165 }
  0xad   :  { %2949 = vmatmul.mubr.msk.bf16.vlgmr.msra.gmra.mrb[0].mxu1 %vm121_vm0, %v3577_v61  ;;  %v1162_v14 = vpop.permute.xlu1 %1161  ;;  %v1171_v16 = vsel %vm1167_vm5, %v1164_v3, %v3970_v11 }
  0xae   :  { %176 = vmatprep.mubr.bf16.mxu1 %v3682_v6  ;;  %3216 = vmatpush3.bf16.msra.mxu1 %v103_v43  ;;  %v1170_v18 = vsel %vm1167_vm5, %v1162_v14, %v1164_v3  ;;  %v3597_v14 = vld [vmem:[%s5054_s1 + $0xf0] sm:$0xff]  }
  0xaf   :  { %3217 = vmatprep.subr.bf16.mxu1 %v109_v55 }
  0xb0   :  { %v1384_v19 = vpop.permute.xlu0 %1383 }
  0xb1   :  { %v3982_v20 = vpop.permute.xlu1 %1385 }
  0xb2   :  { %3003 = vmatmul.mubr.msk.bf16.gmra.mrb[8].mxu0 %vm121_vm0, %v3940_v62  ;;  %3218 = vmatpush3.bf16.msra.mxu1 %v109_v55  ;;  %v1395_v22 = vsel %vm1393_vm6, %v1384_v19, %v3982_v20  ;;  %v2154_v55 = vld [vmem:[%s5057_s4 + $0x20] sm:$0xff] }
  0xb3   :  { %800 = vmatprep.mubr.bf16.mxu0 %v3682_v6  ;;  %3227 = vmatprep.subr.bf16.mxu1 %v3747_v2 }
  0xb4   :  { %v1382_v26 = vpop.permute.xlu0 %1381 }
  0xb5   :  { %2950 = vmatmul.mubr.msk.bf16.gmra.mrb[4].mxu1 %vm121_vm0, %v3579_v63  ;;  %v1390_v30 = vpop.permute.xlu1 %1389 }
  0xb6   :  { %186 = vmatprep.mubr.bf16.mxu1 %v3682_v6 }
  0xb8   :  { %v4044_v33 = vpop.permute.xlu0 %1391 }
  0xb9   :  { %v1388_v36 = vpop.permute.xlu1 %1387 }
  0xba   :  { %3004 = vmatmul.mubr.msk.bf16.gmra.mrb[12].mxu0 %vm121_vm0, %v3954_v0 }
  0xbb   :  { %996 = vmatprep.mubr.bf16.mxu0 %v3682_v6 }
  0xbc   :  { %v1610_v38 = vpop.permute.xlu0 %1609 }
  0xbd   :  { %2951 = vmatmul.mubr.msk.bf16.gmra.mrb[8].mxu1 %vm121_vm0, %v3581_v1  ;;  %v4063_v40 = vpop.permute.xlu1 %1611 }
  0xbe   :  { %196 = vmatprep.mubr.bf16.mxu1 %v3682_v6  ;;  %v1621_v43 = vsel %vm1619_vm7, %v1610_v38, %v4063_v40 }
  0xc2   :  { %3021 = vmatmul.mubr.msk.bf16.vlgmr.msra.gmra.mrb[0].mxu0 %vm121_vm0, %v3967_v5 }
  0xc3   :  { %1006 = vmatprep.mubr.bf16.mxu0 %v3682_v6  ;;  %1191 = vmatpush1.bf16.msra.mxu0 %v1168_v12  ;;  %v3596_v12 = vld [vmem:[%s5054_s1 + $0xe8] sm:$0xff]  }
  0xc4   :  { %1192 = vmatprep.subr.bf16.mxu0 %v1171_v16  ;;  %v3599_v16 = vld [vmem:[%s5054_s1 + $0x100] sm:$0xff]  }
  0xc5   :  { %2952 = vmatmul.mubr.msk.bf16.gmra.mrb[12].mxu1 %vm121_vm0, %v3583_v15 }
  0xc6   :  { %3219 = vmatprep.mubr.msk.bf16.mxu1 %vm121_vm0, %v3577_v61 }
  0xc7   :  { %1193 = vmatpush1.bf16.msra.mxu0 %v1170_v18  ;;  %v3600_v18 = vld [vmem:[%s5054_s1 + $0x108] sm:$0xff]  }
  0xc8   :  { %1416 = vmatprep.subr.bf16.mxu0 %v1395_v22 }
  0xca   :  { %3022 = vmatmul.mubr.msk.bf16.gmra.mrb[4].mxu0 %vm121_vm0, %v3990_v24 }
  0xcb   :  { %1016 = vmatprep.mubr.bf16.mxu0 %v3682_v6 }
  0xcd   :  { %3220 = vmatmul.mubr.msk.bf16.vlgmr.msra.gmra.mrb[16].mxu1 %vm121_vm0, %v3579_v63  ;;  %v3595_v63 = vld [vmem:[%s5054_s1 + $0xe0] sm:$0xff]  }
  0xce   :  { %3228 = vmatpush3.bf16.msra.mxu1 %v3747_v2  ;;  %3223 = vmatprep.mubr.msk.bf16.mxu1 %vm121_vm0, %v3581_v1  ;;  %v4014_v2 = vld [vmem:[%s5054_s1 + $0x98] sm:$0xff]  }
  0xcf   :  { %3229 = vmatprep.subr.bf16.mxu1 %v3760_v4 }
  0xd2   :  { %3230 = vmatpush3.bf16.msra.mxu1 %v3760_v4  ;;  %3023 = vmatmul.mubr.msk.bf16.gmra.mrb[8].mxu0 %vm121_vm0, %v4001_v25  ;;  %v2030_v4 = vld [vmem:[%s5055_s2] sm:$0xff] }
  0xd3   :  { %3239 = vmatprep.subr.bf16.mxu1 %v3851_v13  ;;  %1026 = vmatprep.mubr.bf16.mxu0 %v3682_v6 }
  0xd4   :  { %2040 = vperm.xlu0 %3555, %v2030_v4  }
  0xd5   :  { %3224 = vmatmul.mubr.msk.bf16.gmra.mrb[20].mxu1 %vm121_vm0, %v3583_v15  ;;  %v3598_v15 = vld [vmem:[%s5054_s1 + $0xf8] sm:$0xff]  }
  0xd6   :  { %3231 = vmatprep.mubr.msk.bf16.mxu1 %vm121_vm0, %v3773_v7  ;;  %v2033_v7 = vld [vmem:[%s5055_s2 + $0x18] sm:$0xff] }
  0xd8   :  { %2055 = vperm.xlu0 %3555, %v2033_v7  }
  0xda   :  { %3024 = vmatmul.mubr.msk.bf16.gmra.mrb[12].mxu0 %vm121_vm0, %v4014_v2 }
  0xdb   :  { %1222 = vmatprep.mubr.bf16.mxu0 %v3682_v6 }
  0xdc   :  { %2065 = vperm.xlu0 %3555, %v2035_v37  }
  0xdd   :  { %3232 = vmatmul.mubr.msk.bf16.vlgmr.msra.gmra.mrb[16].mxu1 %vm121_vm0, %v3788_v8  ;;  %v1394_v8 = vsel %vm1393_vm6, %v1382_v26, %v1384_v19  ;;  %v3601_v19 = vld [vmem:[%s5054_s1 + $0x110] sm:$0xff]  }
  0xde   :  { %3240 = vmatpush3.bf16.msra.mxu1 %v3851_v13  ;;  %3235 = vmatprep.mubr.msk.bf16.mxu1 %vm121_vm0, %v3800_v9  ;;  %v2034_v13 = vld [vmem:[%s5055_s2 + $0x20] sm:$0xff]  ;;  %v1397_v9 = vsel %vm1393_vm6, %v1390_v30, %v4044_v33 }
  0xdf   :  { %3241 = vmatprep.subr.bf16.mxu1 %v3854_v17  ;;  %2060 = vperm.xlu1 %3556, %v2034_v13  }
  0xe0   :  { %2075 = vperm.xlu0 %3555, %v2037_v46  }
  0xe2   :  { %3242 = vmatpush3.bf16.msra.mxu1 %v3854_v17  ;;  %3041 = vmatmul.mubr.msk.bf16.vlgmr.msra.gmra.mrb[0].mxu0 %vm121_vm0, %v4039_v32  ;;  %v1396_v17 = vsel %vm1393_vm6, %v1388_v36, %v1390_v30 }
  0xe3   :  { %3251 = vmatprep.subr.bf16.mxu1 %v3862_v23  ;;  %1232 = vmatprep.mubr.bf16.mxu0 %v3682_v6 }
  0xe4   :  { %1417 = vmatpush1.bf16.msra.mxu0 %v1394_v8  ;;  %2174 = vperm.xlu0 %3555, %v2152_v52  }
  0xe5   :  { %3236 = vmatmul.mubr.msk.bf16.gmra.mrb[20].mxu1 %vm121_vm0, %v3812_v10  ;;  %1418 = vmatprep.subr.bf16.mxu0 %v1397_v9  ;;  %v4083_v10 = vld [vmem:[%s5054_s1 + $0xb0] sm:$0xff]  }
  0xe6   :  { %3243 = vmatprep.mubr.msk.bf16.mxu1 %vm121_vm0, %v3860_v21  ;;  %v4098_v21 = vld [vmem:[%s5054_s1 + $0xb8] sm:$0xff]  }
  0xe8   :  { %1419 = vmatpush1.bf16.msra.mxu0 %v1396_v17  ;;  %2169 = vperm.xlu0 %3555, %v2151_v54  }
  0xe9   :  { %1642 = vmatprep.subr.bf16.mxu0 %v1621_v43 }
  0xea   :  { %3042 = vmatmul.mubr.msk.bf16.gmra.mrb[4].mxu0 %vm121_vm0, %v4068_v42 }
  0xeb   :  { %1242 = vmatprep.mubr.bf16.mxu0 %v3682_v6 }
  0xec   :  { %2194 = vperm.xlu0 %3555, %v2156_v57  }
  0xed   :  { %3244 = vmatmul.mubr.msk.bf16.vlgmr.msra.gmra.mrb[16].mxu1 %vm121_vm0, %v3873_v28  ;;  %v1616_v28 = vpop.permute.xlu1 %1615 }
  0xee   :  { %3252 = vmatpush3.bf16.msra.mxu1 %v3862_v23  ;;  %3247 = vmatprep.mubr.msk.bf16.mxu1 %vm121_vm0, %v3888_v35  ;;  %v1608_v23 = vpop.permute.xlu0 %1607 }
  0xef   :  { %3253 = vmatprep.subr.bf16.mxu1 %v3875_v29  ;;  %v1620_v44 = vsel %vm1619_vm7, %v1608_v23, %v1610_v38 }
  0xf1   :  { %v1614_v45 = vpop.permute.xlu1 %1613 }
  0xf2   :  { %3254 = vmatpush3.bf16.msra.mxu1 %v3875_v29  ;;  %3043 = vmatmul.mubr.msk.bf16.gmra.mrb[8].mxu0 %vm121_vm0, %v4083_v10  ;;  %v4111_v29 = vld [vmem:[%s5054_s1 + $0xc0] sm:$0xff]   ;;  %v4116_v35 = vpop.permute.xlu0 %1617 }
  0xf3   :  { %3263 = vmatprep.subr.bf16.mxu1 %v3883_v34  ;;  %1252 = vmatprep.mubr.bf16.mxu0 %v3682_v6 }
  0xf5   :  { %3248 = vmatmul.mubr.msk.bf16.gmra.mrb[20].mxu1 %vm121_vm0, %v3900_v41  ;;  %v2036_v41 = vld [vmem:[%s5055_s2 + $0x30] sm:$0xff] }
  0xf6   :  { %3255 = vmatprep.mubr.msk.bf16.mxu1 %vm121_vm0, %v3910_v48  ;;  %2070 = vperm.xlu1 %3556, %v2036_v41   ;;  %v1836_v47 = vpop.permute.xlu0 %1835  ;;  %v4135_v48 = vpop.permute.xlu1 %1837 }
  0xf7   :  { %v1847_v51 = vsel %vm1845_vm8, %v1836_v47, %v4135_v48 }
  0xfa   :  { %3044 = vmatmul.mubr.msk.bf16.gmra.mrb[12].mxu0 %vm121_vm0, %v4098_v21  ;;  %2164 = vperm.xlu1 %3556, %v2150_v53   ;;  %v1834_v61 = vpop.permute.xlu0 %1833 }
  0xfb   :  { %1448 = vmatprep.mubr.bf16.mxu0 %v3682_v6  ;;  %v1846_v1 = vsel %vm1845_vm8, %v1834_v61, %v1836_v47 }
  0xfd   :  { %3256 = vmatmul.mubr.msk.bf16.vlgmr.msra.gmra.mrb[16].mxu1 %vm121_vm0, %v3927_v58  ;;  %v2157_v58 = vld [vmem:[%s5057_s4 + $0x38] sm:$0xff] }
  0xfe   :  { %3264 = vmatpush3.bf16.msra.mxu1 %v3883_v34  ;;  %3259 = vmatprep.mubr.msk.bf16.mxu1 %vm121_vm0, %v3940_v62  ;;  %v1623_v34 = vsel %vm1619_vm7, %v1616_v28, %v4116_v35  ;;  %v1842_v62 = vpop.permute.xlu1 %1841 }
  0xff   :  { %3265 = vmatprep.subr.bf16.mxu1 %v3895_v39  ;;  %2184 = vperm.xlu1 %3556, %v2154_v55  }
 0x100   :  { %2199 = vperm.xlu0 %3555, %v2157_v58  }
 0x102   :  { %3266 = vmatpush3.bf16.msra.mxu1 %v3895_v39  ;;  %3061 = vmatmul.mubr.msk.bf16.vlgmr.msra.gmra.mrb[0].mxu0 %vm121_vm0, %v4111_v29  ;;  %v1622_v39 = vsel %vm1619_vm7, %v1614_v45, %v1616_v28  ;;  %v1840_v3 = vpop.permute.xlu1 %1839 }
 0x103   :  { %3275 = vmatprep.subr.bf16.mxu1 %v3913_v50  ;;  %1458 = vmatprep.mubr.bf16.mxu0 %v3682_v6 }
 0x104   :  { %1643 = vmatpush1.bf16.msra.mxu0 %v1620_v44 }
 0x105   :  { %3260 = vmatmul.mubr.msk.bf16.gmra.mrb[20].mxu1 %vm121_vm0, %v3954_v0  ;;  %1644 = vmatprep.subr.bf16.mxu0 %v1623_v34  ;;  %v1844_v0 = vpop.permute.xlu0 %1843 }
 0x106   :  { %3267 = vmatprep.mubr.msk.bf16.mxu1 %vm121_vm0, %v3967_v5  ;;  %v1849_v5 = vsel %vm1845_vm8, %v1842_v62, %v1844_v0 }
 0x108   :  { %1645 = vmatpush1.bf16.msra.mxu0 %v1622_v39 }
 0x109   :  { %1868 = vmatprep.subr.bf16.mxu0 %v1847_v51 }
 0x10a   :  { %3062 = vmatmul.mubr.msk.bf16.gmra.mrb[4].mxu0 %vm121_vm0, %v3592_v49 }
 0x10b   :  { %1468 = vmatprep.mubr.bf16.mxu0 %v3682_v6  ;;  %v2046_v17 = vpop.permute.xlu1 %2045 }
 0x10d   :  { %3268 = vmatmul.mubr.msk.bf16.vlgmr.msra.gmra.mrb[16].mxu1 %vm121_vm0, %v3990_v24 }
 0x10e   :  { %3276 = vmatpush3.bf16.msra.mxu1 %v3913_v50  ;;  %3271 = vmatprep.mubr.msk.bf16.mxu1 %vm121_vm0, %v4001_v25  ;;  %v2153_v50 = vld [vmem:[%s5057_s4 + $0x18] sm:$0xff] }
 0x10f   :  { %3277 = vmatprep.subr.bf16.mxu1 %v3970_v11  ;;  %2179 = vperm.xlu1 %3556, %v2153_v50   ;;  %v2051_v45 = vpop.permute.xlu1 %2050 }
 0x112   :  { %3278 = vmatpush3.bf16.msra.mxu1 %v3970_v11  ;;  %3063 = vmatmul.mubr.msk.bf16.gmra.mrb[8].mxu0 %vm121_vm0, %v3593_v56  ;;  %v1848_v11 = vsel %vm1845_vm8, %v1840_v3, %v1842_v62 }
 0x113   :  { %3287 = vmatprep.subr.bf16.mxu1 %v3982_v20  ;;  %1478 = vmatprep.mubr.bf16.mxu0 %v3682_v6 }
 0x114   :  { %2189 = vperm.xlu1 %3556, %v2155_v59  }
 0x115   :  { %3272 = vmatmul.mubr.msk.bf16.gmra.mrb[20].mxu1 %vm121_vm0, %v4014_v2 }
 0x116   :  { %3279 = vmatprep.mubr.msk.bf16.mxu1 %vm121_vm0, %v4039_v32 }
 0x11a   :  { %3064 = vmatmul.mubr.msk.bf16.gmra.mrb[12].mxu0 %vm121_vm0, %v3594_v60 }
 0x11b   :  { %1674 = vmatprep.mubr.bf16.mxu0 %v3682_v6 }
 0x11d   :  { %3280 = vmatmul.mubr.msk.bf16.vlgmr.msra.gmra.mrb[16].mxu1 %vm121_vm0, %v4068_v42 }
 0x11e   :  { %3288 = vmatpush3.bf16.msra.mxu1 %v3982_v20  ;;  %3283 = vmatprep.mubr.msk.bf16.mxu1 %vm121_vm0, %v4083_v10  ;;  %v3602_v20 = vld [vmem:[%s5054_s1 + $0x118] sm:$0xff]  }
 0x11f   :  { %3289 = vmatprep.subr.bf16.mxu1 %v4044_v33 }
 0x122   :  { %3290 = vmatpush3.bf16.msra.mxu1 %v4044_v33  ;;  %3081 = vmatmul.mubr.msk.bf16.vlgmr.msra.gmra.mrb[0].mxu0 %vm121_vm0, %v3595_v63 }
 0x123   :  { %3299 = vmatprep.subr.bf16.mxu1 %v4063_v40  ;;  %1684 = vmatprep.mubr.bf16.mxu0 %v3682_v6 }
 0x124   :  { %1869 = vmatpush1.bf16.msra.mxu0 %v1846_v1 }
 0x125   :  { %3284 = vmatmul.mubr.msk.bf16.gmra.mrb[20].mxu1 %vm121_vm0, %v4098_v21  ;;  %1870 = vmatprep.subr.bf16.mxu0 %v1849_v5 }
 0x126   :  { %3291 = vmatprep.mubr.msk.bf16.mxu1 %vm121_vm0, %v4111_v29 }
 0x128   :  { %1871 = vmatpush1.bf16.msra.mxu0 %v1848_v11 }
 0x12a   :  { %3082 = vmatmul.mubr.msk.bf16.gmra.mrb[4].mxu0 %vm121_vm0, %v3596_v12 }
 0x12b   :  { %1694 = vmatprep.mubr.bf16.mxu0 %v3682_v6 }
 0x12d   :  { %3292 = vmatmul.mubr.msk.bf16.vlgmr.msra.gmra.mrb[16].mxu1 %vm121_vm0, %v3592_v49 }
 0x12e   :  { %3300 = vmatpush3.bf16.msra.mxu1 %v4063_v40  ;;  %3295 = vmatprep.mubr.msk.bf16.mxu1 %vm121_vm0, %v3593_v56 }
 0x12f   :  { %3301 = vmatprep.subr.bf16.mxu1 %v4116_v35 }
 0x132   :  { %3302 = vmatpush3.bf16.msra.mxu1 %v4116_v35  ;;  %3083 = vmatmul.mubr.msk.bf16.gmra.mrb[8].mxu0 %vm121_vm0, %v3597_v14 }
 0x133   :  { %3311 = vmatprep.subr.bf16.mxu1 %v4135_v48  ;;  %1704 = vmatprep.mubr.bf16.mxu0 %v3682_v6 }
 0x135   :  { %3296 = vmatmul.mubr.msk.bf16.gmra.mrb[20].mxu1 %vm121_vm0, %v3594_v60 }
 0x136   :  { %3303 = vmatprep.mubr.msk.bf16.mxu1 %vm121_vm0, %v3595_v63 }
 0x13a   :  { %3084 = vmatmul.mubr.msk.bf16.gmra.mrb[12].mxu0 %vm121_vm0, %v3598_v15 }
 0x13b   :  { %1900 = vmatprep.mubr.bf16.mxu0 %v3682_v6 }
 0x13d   :  { %3304 = vmatmul.mubr.msk.bf16.vlgmr.msra.gmra.mrb[16].mxu1 %vm121_vm0, %v3596_v12 }
 0x13e   :  { %3312 = vmatpush3.bf16.msra.mxu1 %v4135_v48  ;;  %3307 = vmatprep.mubr.msk.bf16.mxu1 %vm121_vm0, %v3597_v14 }
 0x13f   :  { %3313 = vmatprep.subr.bf16.mxu1 %v1844_v0 }
 0x142   :  { %3101 = vmatmul.mubr.msk.bf16.vlgmr.msra.gmra.mrb[0].mxu0 %vm121_vm0, %v3599_v16  ;;  %3314 = vmatpush3.bf16.msra.mxu1 %v1844_v0 }
 0x143   :  { %1910 = vmatprep.mubr.bf16.mxu0 %v3682_v6 }
 0x145   :  { %3308 = vmatmul.mubr.msk.bf16.gmra.mrb[20].mxu1 %vm121_vm0, %v3598_v15 }
 0x146   :  { %3315 = vmatprep.mubr.msk.bf16.mxu1 %vm121_vm0, %v3599_v16 }
 0x14a   :  { %3102 = vmatmul.mubr.msk.bf16.gmra.mrb[4].mxu0 %vm121_vm0, %v3600_v18 }
 0x14b   :  { %1920 = vmatprep.mubr.bf16.mxu0 %v3682_v6 }
 0x14d   :  { %3316 = vmatmul.mubr.msk.bf16.vlgmr.msra.gmra.mrb[16].mxu1 %vm121_vm0, %v3600_v18 }
 0x14e   :  { %3319 = vmatprep.mubr.msk.bf16.mxu1 %vm121_vm0, %v3601_v19 }
 0x152   :  { %3103 = vmatmul.mubr.msk.bf16.gmra.mrb[8].mxu0 %vm121_vm0, %v3601_v19 }
 0x153   :  { %1930 = vmatprep.mubr.bf16.mxu0 %v3682_v6  ;;  %v2041_v43 = vpop.permute.xlu0 %2040 }
 0x155   :  { %3320 = vmatmul.mubr.msk.bf16.gmra.mrb[20].mxu1 %vm121_vm0, %v3602_v20 }
 0x156   :  { %2303 = vmatprep.mubr.bf16.mxu1 %v3682_v6 }
 0x157   :  { %v2056_v53 = vpop.permute.xlu0 %2055 }
 0x15a   :  { %3104 = vmatmul.mubr.msk.bf16.gmra.mrb[12].mxu0 %vm121_vm0, %v3602_v20 }
 0x15b   :  { %v2066_v19 = vpop.permute.xlu0 %2065 }
 0x15e   :  { %v2061_v0 = vpop.permute.xlu1 %2060 }
 0x180   :  { %v168_v22 = vpop.f32.mrb[0].mxu1 }
 0x181   :  { %v170_v24 = vpop.f32.mrb[1].mxu1 }
 0x182   :  { %v172_v25 = vpop.f32.mrb[2].mxu1 }
 0x183   :  { %v174_v2 = vpop.f32.mrb[3].mxu1 }
 0x188   :  { %v178_v26 = vpop.f32.mrb[4].mxu1 }
 0x189   :  { %v180_v4 = vpop.f32.mrb[5].mxu1 }
 0x18a   :  { %v182_v27 = vpop.f32.mrb[6].mxu1 }
 0x18b   :  { %v184_v30 = vpop.f32.mrb[7].mxu1 }
 0x190   :  { %v4263_v7 = vpop.f32.mrb[8].mxu1 }
 0x191   :  { %v4265_v31 = vpop.f32.mrb[9].mxu1 }
 0x192   :  { %v4267_v32 = vpop.f32.mrb[10].mxu1 }
 0x193   :  { %v4269_v33 = vpop.f32.mrb[11].mxu1 }
 0x198   :  { %v4271_v8 = vpop.f32.mrb[12].mxu1 }
 0x199   :  { %v4273_v36 = vpop.f32.mrb[13].mxu1 }
 0x19a   :  { %v4275_v13 = vpop.f32.mrb[14].mxu1 }
 0x19b   :  { %v4277_v9 = vpop.f32.mrb[15].mxu1 }
 0x215   :  { %v1902_v37 = vpop.f32.mrb[0].mxu0 }
 0x216   :  { %v3343_v38 = vadd.f32 %v1902_v37, %v168_v22  ;;  %v1904_v40 = vpop.f32.mrb[1].mxu0 }
 0x217   :  { %v3344_v42 = vadd.f32 %v1904_v40, %v170_v24  ;;  %v1906_v10 = vpop.f32.mrb[2].mxu0 }
 0x218   :  { %v2078_v21 = vadd.f32 %v3343_v38, %v2041_v43  ;;  %v3345_v23 = vadd.f32 %v1906_v10, %v172_v25  ;;  %v1908_v28 = vpop.f32.mrb[3].mxu0 }
 0x219   :  { %v2079_v29 = vadd.f32 %v3344_v42, %v2041_v43  ;;  %v3346_v35 = vadd.f32 %v1908_v28, %v174_v2 }
 0x21a   :  { %v2081_v41 = vadd.f32 %v3345_v23, %v2046_v17  ;;  %v2102_v34 = vmax.f32 %v2078_v21, 0.0 }
 0x21b   :  { %v2082_v44 = vadd.f32 %v3346_v35, %v2046_v17  ;;  %v2103_v39 = vmax.f32 %v2079_v29, 0.0 }
 0x21c   :  { %v2105_v46 = vmax.f32 %v2081_v41, 0.0 }
 0x21d   :  { %v2106_v47 = vmax.f32 %v2082_v44, 0.0  ;;  %v1912_v48 = vpop.f32.mrb[4].mxu0 }
 0x21e   :  { %v2138_v49 = vpack.c.bf16 %v2105_v46, %v2102_v34  ;;  %v3347_v51 = vadd.f32 %v1912_v48, %v178_v26  ;;  %v1914_v52 = vpop.f32.mrb[5].mxu0  ;;  %v2076_v46 = vpop.permute.xlu0 %2075 }
 0x21f   :  { %v3348_v54 = vadd.f32 %v1914_v52, %v180_v4  ;;  %v1916_v55 = vpop.f32.mrb[6].mxu0  ;;  %v2139_v56 = vpack.c.bf16 %v2106_v47, %v2103_v39 }
 0x220   :  { %v2084_v57 = vadd.f32 %v3347_v51, %v2051_v45  ;;  %v3349_v50 = vadd.f32 %v1916_v55, %v182_v27  ;;  %v1918_v58 = vpop.f32.mrb[7].mxu0  ;;  %v3317_v59 = vpop.f32.mrb[16].mxu1 }
 0x221   :  { %v2085_v60 = vadd.f32 %v3348_v54, %v2051_v45  ;;  %v3350_v61 = vadd.f32 %v1918_v58, %v184_v30  ;;  %v2086_v62 = vadd.f32 %v3317_v59, %v2051_v45  ;;  %v1975_v63 = vpop.f32.mrb[17].mxu1  ;;  %2271 = vmatprep.subr.bf16.mxu1 %v2139_v56 }
 0x222   :  { %v2087_v1 = vadd.f32 %v3349_v50, %v2056_v53  ;;  %v2080_v3 = vadd.f32 %v2041_v43, %v1975_v63  ;;  %v3318_v5 = vpop.f32.mrb[18].mxu1  ;;  %2272 = vmatpush1.bf16.msra.mxu1 %v2138_v49  ;;  %v2108_v15 = vmax.f32 %v2084_v57, 0.0  ;;  %v2071_v43 = vpop.permute.xlu1 %2070 }
 0x223   :  { %v2088_v11 = vadd.f32 %v3350_v61, %v2056_v53  ;;  %v2089_v12 = vadd.f32 %v3318_v5, %v2056_v53  ;;  %v1978_v14 = vpop.f32.mrb[19].mxu1  ;;  %v2109_v20 = vmax.f32 %v2085_v60, 0.0  ;;  %v2110_v22 = vmax.f32 %v2086_v62, 0.0 }
 0x224   :  { %v2111_v16 = vmax.f32 %v2087_v1, 0.0  ;;  %v2083_v18 = vadd.f32 %v2046_v17, %v1978_v14  ;;  %v2104_v4 = vmax.f32 %v2080_v3, 0.0 }
 0x225   :  { %v2112_v24 = vmax.f32 %v2088_v11, 0.0  ;;  %v2113_v25 = vmax.f32 %v2089_v12, 0.0  ;;  %v1922_v2 = vpop.f32.mrb[8].mxu0 }
 0x226   :  { %v2141_v26 = vpack.c.bf16 %v2111_v16, %v2108_v15  ;;  %v2107_v27 = vmax.f32 %v2083_v18, 0.0  ;;  %v3351_v30 = vadd.f32 %v1922_v2, %v4263_v7  ;;  %v1924_v37 = vpop.f32.mrb[9].mxu0  ;;  %v3608_v2 = vld [vmem:[%s5056_s3 + $0x28] sm:$0xff]  }
 0x227   :  { %v4280_v38 = vpack.c.bf16 %v2113_v25, %v2110_v22  ;;  %v3352_v40 = vadd.f32 %v1924_v37, %v4265_v31  ;;  %v1926_v42 = vpop.f32.mrb[10].mxu0  ;;  %v2142_v10 = vpack.c.bf16 %v2112_v24, %v2109_v20  ;;  %v3603_v22 = vld [vmem:[%s5056_s3] sm:$0xff]   ;;  %v3606_v24 = vld [vmem:[%s5056_s3 + $0x18] sm:$0xff]   ;;  %v4326_v37 = vpop.permute.xlu0 %2174 }
 0x228   :  { %v2140_v17 = vpack.c.bf16 %v2107_v27, %v2104_v4  ;;  %v2090_v21 = vadd.f32 %v3351_v30, %v2061_v0  ;;  %v3353_v23 = vadd.f32 %v1926_v42, %v4267_v32  ;;  %v3321_v28 = vpop.f32.mrb[20].mxu1  ;;  %v1928_v29 = vpop.f32.mrb[11].mxu0  ;;  %v3607_v25 = vld [vmem:[%s5056_s3 + $0x20] sm:$0xff]  }
 0x229   :  { %v2091_v35 = vadd.f32 %v3352_v40, %v2061_v0  ;;  %v2098_v41 = vadd.f32 %v3321_v28, %v2071_v43  ;;  %v3354_v44 = vadd.f32 %v1928_v29, %v4269_v33  ;;  %v1991_v45 = vpop.f32.mrb[21].mxu1  ;;  %2273 = vmatprep.subr.bf16.mxu1 %v2142_v10  ;;  %v4328_v40 = vpop.permute.xlu1 %2164 }
 0x22a   :  { %v2093_v7 = vadd.f32 %v3353_v23, %v2066_v19  ;;  %v2092_v34 = vadd.f32 %v2061_v0, %v1991_v45  ;;  %v3322_v39 = vpop.f32.mrb[22].mxu1  ;;  %2274 = vmatpush1.bf16.msra.mxu1 %v2141_v26  ;;  %v2114_v49 = vmax.f32 %v2090_v21, 0.0  ;;  %v2481_v26 = vlaneseq }
 0x22b   :  { %v2094_v31 = vadd.f32 %v3354_v44, %v2066_v19  ;;  %v2101_v47 = vadd.f32 %v3322_v39, %v2076_v46  ;;  %v1994_v48 = vpop.f32.mrb[23].mxu1  ;;  %v2115_v32 = vmax.f32 %v2091_v35, 0.0  ;;  %v2122_v53 = vmax.f32 %v2098_v41, 0.0  ;;  %v4335_v23 = vpop.permute.xlu0 %2169 }
 0x22c   :  { %v2117_v51 = vmax.f32 %v2093_v7, 0.0  ;;  %v2095_v52 = vadd.f32 %v2066_v19, %v1994_v48  ;;  %v2116_v33 = vmax.f32 %v2092_v34, 0.0 }
 0x22d   :  { %v2118_v54 = vmax.f32 %v2094_v31, 0.0  ;;  %v2125_v55 = vmax.f32 %v2101_v47, 0.0  ;;  %v1932_v56 = vpop.f32.mrb[12].mxu0  ;;  %v4349_v45 = vpop.permute.xlu1 %2184 }
 0x22e   :  { %v2144_v57 = vpack.c.bf16 %v2117_v51, %v2114_v49  ;;  %v2119_v50 = vmax.f32 %v2095_v52, 0.0  ;;  %v3355_v58 = vadd.f32 %v1932_v56, %v4271_v8  ;;  %v1934_v59 = vpop.f32.mrb[13].mxu0 }
 0x22f   :  { %v2149_v60 = vpack.c.bf16 %v2125_v55, %v2122_v53  ;;  %v3356_v61 = vadd.f32 %v1934_v59, %v4273_v36  ;;  %v1936_v62 = vpop.f32.mrb[14].mxu0  ;;  %v2145_v63 = vpack.c.bf16 %v2118_v54, %v2115_v32 }
 0x230   :  { %v2146_v0 = vpack.c.bf16 %v2119_v50, %v2116_v33  ;;  %v2096_v1 = vadd.f32 %v3355_v58, %v2071_v43  ;;  %v3357_v3 = vadd.f32 %v1936_v62, %v4275_v13  ;;  %v1938_v5 = vpop.f32.mrb[15].mxu0  ;;  %v3604_v13 = vld [vmem:[%s5056_s3 + $0x8] sm:$0xff]  }
 0x231   :  { %v2097_v11 = vadd.f32 %v3356_v61, %v2071_v43  ;;  %v3358_v12 = vadd.f32 %v1938_v5, %v4277_v9  ;;  %2275 = vmatprep.subr.bf16.mxu1 %v2145_v63  ;;  %v3605_v9 = vld [vmem:[%s5056_s3 + $0x10] sm:$0xff]   ;;  %v4373_v49 = vpop.permute.xlu1 %2179  ;;  %v3690_v5 = vmov 0.0   ;;  %s3692_s3 = smov [#allocation2]  }
 0x232   :  { %v2099_v14 = vadd.f32 %v3357_v3, %v2076_v46  ;;  %2276 = vmatpush1.bf16.msra.mxu1 %v2144_v57  ;;  %v2120_v16 = vmax.f32 %v2096_v1, 0.0  ;;  %v4425_v3 = vpop.permute.xlu0 %2194  ;;  %s2921_s14 = sshll.u32 %s3692_s3, 4  ;;  %s2922_s14 = int_to_ptr.vmem [resolvable:$true] %s2921_s14 }
 0x233   :  { %v2100_v15 = vadd.f32 %v3358_v12, %v2076_v46  ;;  %v2121_v18 = vmax.f32 %v2097_v11, 0.0  ;;  %s3657_s0 = scalar_lea.vmem %s2922_s14, 16  ;;  %s3661_s2 = scalar_lea.vmem %s2922_s14, 32 }
 0x234   :  { %v2123_v8 = vmax.f32 %v2099_v14, 0.0  ;;  %p3658_p0 = scmp.ne.s32.totalorder %s2922_s14, %s3657_s0  ;;  %p3662_p1 = scmp.lt.s32.totalorder %s2922_s14, %s2922_s14 }
 0x235   :  { %v2124_v19 = vmax.f32 %v2100_v15, 0.0  ;;  %v4410_v59 = vpop.permute.xlu1 %2189  ;;  %p3663_p2 = scmp.lt.s32.totalorder %s3661_s2, %s3657_s0 }
 0x236   :  { %v2147_v20 = vpack.c.bf16 %v2123_v8, %v2120_v16 }
 0x237   :  { %v2148_v36 = vpack.c.bf16 %v2124_v19, %v2121_v18  ;;  %p3664_p3 = por %p3663_p2, %p3662_p1 }
 0x239   :  { %2277 = vmatprep.subr.bf16.mxu1 %v2148_v36  ;;  %p3665_p4 = pnand %p3664_p3, %p3658_p0 }
 0x23a   :  { %2278 = vmatpush1.bf16.msra.mxu1 %v2147_v20 }
 0x23b   :  { %3323 = vmatprep.subr.bf16.mxu1 %v2140_v17 }
 0x23d   :  { %3115 = vmatmul.mubr.msk.bf16.vlgmr.msra.gmra.mrb[24].mxu1 %vm2252_vm9, %v3603_v22 }
 0x23e   :  { %3324 = vmatpush3.bf16.msra.mxu1 %v2140_v17  ;;  %2313 = vmatprep.mubr.bf16.mxu1 %v3682_v6 }
 0x23f   :  { %3325 = vmatprep.subr.bf16.mxu1 %v4280_v38 }
 0x242   :  { %3326 = vmatpush3.bf16.msra.mxu1 %v4280_v38 }
 0x243   :  { %3327 = vmatprep.subr.bf16.mxu1 %v2146_v0 }
 0x245   :  { %3116 = vmatmul.mubr.msk.bf16.gmra.mrb[28].mxu1 %vm2252_vm9, %v3604_v13 }
 0x246   :  { %3328 = vmatpush3.bf16.msra.mxu1 %v2146_v0  ;;  %2323 = vmatprep.mubr.bf16.mxu1 %v3682_v6 }
 0x247   :  { %3329 = vmatprep.subr.bf16.mxu1 %v2149_v60 }
 0x24a   :  { %3330 = vmatpush3.bf16.msra.mxu1 %v2149_v60 }
 0x24d   :  { %3117 = vmatmul.mubr.msk.bf16.gmra.mrb[32].mxu1 %vm2252_vm9, %v3605_v9 }
 0x24e   :  { %2333 = vmatprep.mubr.bf16.mxu1 %v3682_v6 }
 0x255   :  { %3118 = vmatmul.mubr.msk.bf16.gmra.mrb[36].mxu1 %vm2252_vm9, %v3606_v24 }
 0x256   :  { %2343 = vmatprep.mubr.bf16.mxu1 %v3682_v6 }
 0x25d   :  { %3119 = vmatmul.mubr.msk.bf16.gmra.mrb[40].mxu1 %vm2252_vm9, %v3607_v25 }
 0x25e   :  { %2353 = vmatprep.mubr.bf16.mxu1 %v3682_v6  ;;  %v2482_v6 = vand.u32 127, %v2481_v26 }
 0x260   :  { %v2483_v4 = vadd.s32 128, %v2482_v6  ;;  %v2485_v27 = vcvt.s32.f32 %v2482_v6  ;;  %v2484_v1 = vadd.s32 256, %v2482_v6 }
 0x262   :  { %v2486_v30 = vcvt.s32.f32 %v2483_v4  ;;  %v2488_v38 = vadd.f32 0.5, %v2485_v27  ;;  %v2487_v18 = vcvt.s32.f32 %v2484_v1 }
 0x264   :  { %v2489_v42 = vadd.f32 0.5, %v2486_v30  ;;  %v4333_v17 = vmul.f32 0.055555556, %v2488_v38  ;;  %v2490_v6 = vadd.f32 0.5, %v2487_v18 }
 0x265   :  { %3120 = vmatmul.mubr.msk.bf16.gmra.mrb[44].mxu1 %vm2252_vm9, %v3608_v2 }
 0x266   :  { %3331 = vmatprep.mubr.msk.bf16.mxu1 %vm2252_vm9, %v3603_v22  ;;  %v4340_v29 = vmul.f32 0.055555556, %v2489_v42  ;;  %v5063_v34 = vfloor.f32 %v4333_v17  ;;  %v4488_v42 = vmul.f32 0.055555556, %v2490_v6 }
 0x268   :  { %v5062_v46 = vfloor.f32 %v4340_v29  ;;  %v2497_v31 = vmul.f32 18.0, %v5063_v34 }
 0x26a   :  { %v2498_v51 = vmul.f32 18.0, %v5062_v46  ;;  %v4394_v56 = vsub.f32 %v2485_v27, %v2497_v31  ;;  %v5061_v31 = vfloor.f32 %v4488_v42 }
 0x26c   :  { %v4400_v57 = vsub.f32 %v2486_v30, %v2498_v51  ;;  %vm2503_vm10 = vcmp.lt.f32.partialorder %v4394_v56, 16.0 }
 0x26d   :  { %3332 = vmatmul.mubr.msk.bf16.vlgmr.msra.gmra.mrb[48].mxu1 %vm2252_vm9, %v3604_v13  ;;  %v4427_v11 = vsel %vm2503_vm10, 1.0, %v3690_v5  ;;  %v4455_v13 = vpop.permute.xlu0 %2199 }
 0x26e   :  { %3335 = vmatprep.mubr.msk.bf16.mxu1 %vm2252_vm9, %v3605_v9  ;;  %vm2504_vm11 = vcmp.lt.f32.partialorder %v4400_v57, 16.0 }
 0x26f   :  { %v4438_v15 = vsel %vm2504_vm11, 1.0, %v3690_v5 }
 0x275   :  { %3336 = vmatmul.mubr.msk.bf16.gmra.mrb[52].mxu1 %vm2252_vm9, %v3606_v24 }
 0x276   :  { %3339 = vmatprep.mubr.msk.bf16.mxu1 %vm2252_vm9, %v3607_v25 }
 0x27d   :  { %3340 = vmatmul.mubr.msk.bf16.gmra.mrb[56].mxu1 %vm2252_vm9, %v3608_v2 }
 0x310   :  { %v2305_v43 = vpop.f32.mrb[24].mxu1 }
 0x311   :  { %v4331_v10 = vadd.f32 %v2305_v43, %v4328_v40  ;;  %v2307_v21 = vpop.f32.mrb[25].mxu1 }
 0x312   :  { %v4338_v28 = vadd.f32 %v2307_v21, %v4328_v40  ;;  %v2309_v35 = vpop.f32.mrb[26].mxu1 }
 0x313   :  { %2445 = vst [vmem:[%s5059_s6] sm:$0xff] %v4331_v10  ;;  %v4347_v41 = vadd.f32 %v2309_v35, %v4335_v23  ;;  %v2311_v44 = vpop.f32.mrb[27].mxu1 }
 0x314   :  { %2446 = vst [vmem:[%s5059_s6 + $0x8] sm:$0xff] %v4338_v28  ;;  %v4356_v7 = vadd.f32 %v2311_v44, %v4335_v23  ;;  %v2510_v1 = vmul.f32 %v4338_v28, %v4338_v28 }
 0x315   :  { %2448 = vst [vmem:[%s5059_s6 + $0x18] sm:$0xff] %v4347_v41 }
 0x316   :  { %2449 = vst [vmem:[%s5059_s6 + $0x20] sm:$0xff] %v4356_v7  ;;  %v2516_v6 = vmul.f32 %v2510_v1, %v4438_v15 }
 0x318   :  { %v2315_v39 = vpop.f32.mrb[28].mxu1 }
 0x319   :  { %v4371_v47 = vadd.f32 %v2315_v39, %v4326_v37  ;;  %v2317_v48 = vpop.f32.mrb[29].mxu1 }
 0x31a   :  { %v4378_v52 = vadd.f32 %v2317_v48, %v4326_v37  ;;  %v2319_v32 = vpop.f32.mrb[30].mxu1  ;;  %v2499_v48 = vmul.f32 18.0, %v5061_v31 }
 0x31b   :  { %2451 = vst [vmem:[%s5059_s6 + $0x30] sm:$0xff] %v4371_v47  ;;  %v4385_v53 = vadd.f32 %v2319_v32, %v4373_v49  ;;  %v2321_v54 = vpop.f32.mrb[31].mxu1 }
 0x31c   :  { %2452 = vst [vmem:[%s5059_s6 + $0x38] sm:$0xff] %v4378_v52  ;;  %v4392_v55 = vadd.f32 %v2321_v54, %v4373_v49 }
 0x31d   :  { %5067 = vst [vmem:[#allocation5_spill] sm:$0xff] %v4385_v53  ;;  %2454 = vst [vmem:[%s5059_s6 + $0x48] sm:$0xff] %v4385_v53 }
 0x31e   :  { %5068 = vst [vmem:[#allocation6_spill] sm:$0xff] %v4392_v55  ;;  %2455 = vst [vmem:[%s5059_s6 + $0x50] sm:$0xff] %v4392_v55 }
 0x320   :  { %v2325_v33 = vpop.f32.mrb[32].mxu1 }
 0x321   :  { %v4408_v50 = vadd.f32 %v2325_v33, %v4349_v45  ;;  %v2327_v58 = vpop.f32.mrb[33].mxu1 }
 0x322   :  { %v4414_v60 = vadd.f32 %v2327_v58, %v4349_v45  ;;  %v2329_v61 = vpop.f32.mrb[34].mxu1  ;;  %v4511_v58 = vsub.f32 %v2487_v18, %v2499_v48 }
 0x323   :  { %2457 = vst [vmem:[%s5059_s6 + $0x60] sm:$0xff] %v4408_v50  ;;  %v2567_v62 = vmul.f32 %v4408_v50, %v4408_v50  ;;  %v4423_v63 = vadd.f32 %v2329_v61, %v4410_v59  ;;  %v2331_v0 = vpop.f32.mrb[35].mxu1  ;;  %v2538_v61 = vmul.f32 %v4371_v47, %v4371_v47 }
 0x324   :  { %2458 = vst [vmem:[%s5059_s6 + $0x68] sm:$0xff] %v4414_v60  ;;  %v2568_v12 = vmul.f32 %v4414_v60, %v4414_v60  ;;  %v4436_v14 = vadd.f32 %v2331_v0, %v4410_v59  ;;  %v2509_v0 = vmul.f32 %v4331_v10, %v4331_v10  ;;  %vm2505_vm12 = vcmp.lt.f32.partialorder %v4511_v58, 16.0 }
 0x325   :  { %v2573_v16 = vmul.f32 %v2567_v62, %v4427_v11  ;;  %2460 = vst [vmem:[%s5059_s6 + $0x78] sm:$0xff] %v4423_v63  ;;  %v2539_v62 = vmul.f32 %v4378_v52, %v4378_v52  ;;  %v2544_v18 = vmul.f32 %v2538_v61, %v4427_v11 }
 0x326   :  { %v2574_v8 = vmul.f32 %v2568_v12, %v4438_v15  ;;  %2461 = vst [vmem:[%s5059_s6 + $0x80] sm:$0xff] %v4436_v14 }
 0x328   :  { %v4450_v19 = vadd.f32 %v2574_v8, %v2573_v16  ;;  %v2335_v20 = vpop.f32.mrb[36].mxu1 }
 0x329   :  { %v4453_v36 = vadd.f32 %v2335_v20, %v4425_v3  ;;  %v2337_v22 = vpop.f32.mrb[37].mxu1  ;;  %v2545_v20 = vmul.f32 %v2539_v62, %v4438_v15  ;;  %v2542_v62 = vmul.f32 %v4392_v55, %v4392_v55 }
 0x32a   :  { %v4458_v9 = vadd.f32 %v2337_v22, %v4425_v3  ;;  %v2339_v24 = vpop.f32.mrb[38].mxu1  ;;  %v4527_v22 = vsel %vm2505_vm12, 1.0, %v3690_v5 }
 0x32b   :  { %2463 = vst [vmem:[%s5059_s6 + $0x90] sm:$0xff] %v4453_v36  ;;  %v2596_v25 = vmul.f32 %v4453_v36, %v4453_v36  ;;  %v4467_v2 = vadd.f32 %v2339_v24, %v4455_v13  ;;  %v2341_v26 = vpop.f32.mrb[39].mxu1  ;;  %v2550_v61 = vadd.f32 %v2545_v20, %v2544_v18  ;;  %v2548_v46 = vmul.f32 %v2542_v62, %v4438_v15 }
 0x32c   :  { %2464 = vst [vmem:[%s5059_s6 + $0x98] sm:$0xff] %v4458_v9  ;;  %v2597_v4 = vmul.f32 %v4458_v9, %v4458_v9  ;;  %v4476_v27 = vadd.f32 %v2341_v26, %v4455_v13  ;;  %v2515_v26 = vmul.f32 %v2509_v0, %v4427_v11 }
 0x32d   :  { %v2602_v30 = vmul.f32 %v2596_v25, %v4427_v11  ;;  %2466 = vst [vmem:[%s5059_s6 + $0xa8] sm:$0xff] %v4467_v2 }
 0x32e   :  { %v2603_v38 = vmul.f32 %v2597_v4, %v4438_v15  ;;  %2467 = vst [vmem:[%s5059_s6 + $0xb0] sm:$0xff] %v4476_v27  ;;  %v2521_v1 = vadd.f32 %v2516_v6, %v2515_v26 }
 0x330   :  { %v4490_v43 = vadd.f32 %v2603_v38, %v2602_v30  ;;  %v4492_v21 = vpop.f32.mrb[40].mxu1 }
 0x331   :  { %v4494_v35 = vpop.f32.mrb[41].mxu1 }
 0x332   :  { %v4496_v44 = vpop.f32.mrb[42].mxu1 }
 0x333   :  { %v4498_v39 = vpop.f32.mrb[43].mxu1 }
 0x338   :  { %v4503_v51 = vpop.f32.mrb[44].mxu1 }
 0x339   :  { %v4505_v32 = vpop.f32.mrb[45].mxu1 }
 0x33a   :  { %v4507_v54 = vpop.f32.mrb[46].mxu1 }
 0x33b   :  { %v4509_v33 = vpop.f32.mrb[47].mxu1 }
 0x340   :  { %v3333_v12 = vpop.f32.mrb[48].mxu1 }
 0x341   :  { %v4523_v16 = vadd.f32 %v3333_v12, %v4326_v37  ;;  %v2398_v8 = vpop.f32.mrb[49].mxu1 }
 0x342   :  { %v4530_v24 = vadd.f32 %v2398_v8, %v4328_v40  ;;  %v3334_v25 = vpop.f32.mrb[50].mxu1  ;;  %v2541_v40 = vmul.f32 %v4385_v53, %v4385_v53 }
 0x343   :  { %2453 = vst.msk [vmem:[%s5059_s6 + $0x40] sm:$0xff] %vm121_vm0, %v4523_v16  ;;  %v2540_v37 = vmul.f32 %v4523_v16, %v4523_v16  ;;  %v4542_v5 = vadd.f32 %v3334_v25, %v4373_v49  ;;  %v2401_v4 = vpop.f32.mrb[51].mxu1  ;;  %v2512_v49 = vmul.f32 %v4347_v41, %v4347_v41 }
 0x344   :  { %2447 = vst.msk [vmem:[%s5059_s6 + $0x10] sm:$0xff] %vm121_vm0, %v4530_v24  ;;  %v2511_v30 = vmul.f32 %v4530_v24, %v4530_v24  ;;  %v4554_v38 = vadd.f32 %v2401_v4, %v4335_v23  ;;  %v2547_v8 = vmul.f32 %v2541_v40, %v4427_v11 }
 0x345   :  { %5069 = vst [vmem:[#allocation7_spill] sm:$0xff] %v4542_v5  ;;  %v2546_v48 = vmul.f32 %v2540_v37, %v4527_v22  ;;  %2456 = vst.msk [vmem:[%s5059_s6 + $0x58] sm:$0xff] %vm121_vm0, %v4542_v5  ;;  %v2543_v23 = vmul.f32 %v4542_v5, %v4542_v5  ;;  %v2518_v4 = vmul.f32 %v2512_v49, %v4427_v11 }
 0x346   :  { %v2517_v0 = vmul.f32 %v2511_v30, %v4527_v22  ;;  %2450 = vst.msk [vmem:[%s5059_s6 + $0x28] sm:$0xff] %vm121_vm0, %v4554_v38  ;;  %v2514_v18 = vmul.f32 %v4554_v38, %v4554_v38  ;;  %v2513_v30 = vmul.f32 %v4356_v7, %v4356_v7  ;;  %v2570_v49 = vmul.f32 %v4423_v63, %v4423_v63 }
 0x347   :  { %v2551_v12 = vsel %vm121_vm0, %v2546_v48, 0.0 }
 0x348   :  { %v3337_v20 = vpop.f32.mrb[52].mxu1  ;;  %v2552_v25 = vadd.f32 %v2551_v12, %v2550_v61  ;;  %v2522_v37 = vsel %vm121_vm0, %v2517_v0, 0.0  ;;  %v2549_v61 = vmul.f32 %v2543_v23, %v4527_v22 }
 0x349   :  { %v4583_v31 = vadd.f32 %v3337_v20, %v4425_v3  ;;  %v2414_v26 = vpop.f32.mrb[53].mxu1  ;;  %v2523_v6 = vadd.f32 %v2522_v37, %v2521_v1  ;;  %v2520_v20 = vmul.f32 %v2514_v18, %v4527_v22  ;;  %v2519_v37 = vmul.f32 %v2513_v30, %v4438_v15 }
 0x34a   :  { %v4586_v48 = vadd.f32 %v2414_v26, %v4349_v45  ;;  %v3338_v40 = vpop.f32.mrb[54].mxu1  ;;  %v2553_v12 = vadd.f32 %v2552_v25, %v2547_v8  ;;  %v2555_v18 = vsel %vm121_vm0, %v2549_v61, 0.0  ;;  %v2571_v26 = vmul.f32 %v4436_v14, %v4436_v14 }
 0x34b   :  { %2465 = vst.msk [vmem:[%s5059_s6 + $0xa0] sm:$0xff] %vm121_vm0, %v4583_v31  ;;  %v2598_v3 = vmul.f32 %v4583_v31, %v4583_v31  ;;  %v4600_v45 = vadd.f32 %v3338_v40, %v4455_v13  ;;  %v2417_v0 = vpop.f32.mrb[55].mxu1  ;;  %v2524_v62 = vadd.f32 %v2523_v6, %v2518_v4  ;;  %v2599_v13 = vmul.f32 %v4467_v2, %v4467_v2 }
 0x34c   :  { %2459 = vst.msk [vmem:[%s5059_s6 + $0x70] sm:$0xff] %vm121_vm0, %v4586_v48  ;;  %v2569_v23 = vmul.f32 %v4586_v48, %v4586_v48  ;;  %v4610_v1 = vadd.f32 %v2417_v0, %v4410_v59  ;;  %v2554_v8 = vadd.f32 %v2553_v12, %v2548_v46  ;;  %v2600_v30 = vmul.f32 %v4476_v27, %v4476_v27 }
 0x34d   :  { %v2604_v25 = vmul.f32 %v2598_v3, %v4527_v22  ;;  %2468 = vst.msk [vmem:[%s5059_s6 + $0xb8] sm:$0xff] %vm121_vm0, %v4600_v45  ;;  %v2601_v46 = vmul.f32 %v4600_v45, %v4600_v45  ;;  %v2525_v40 = vadd.f32 %v2524_v62, %v2519_v37  ;;  %v2576_v12 = vmul.f32 %v2570_v49, %v4427_v11 }
 0x34e   :  { %v2575_v4 = vmul.f32 %v2569_v23, %v4527_v22  ;;  %2462 = vst.msk [vmem:[%s5059_s6 + $0x88] sm:$0xff] %vm121_vm0, %v4610_v1  ;;  %v2572_v59 = vmul.f32 %v4610_v1, %v4610_v1  ;;  %v2556_v6 = vadd.f32 %v2555_v18, %v2554_v8  ;;  %v2526_v3 = vsel %vm121_vm0, %v2520_v20, 0.0 }
 0x34f   :  { %v2609_v0 = vsel %vm121_vm0, %v2604_v25, 0.0  ;;  %v2605_v34 = vmul.f32 %v2599_v13, %v4427_v11  ;;  %v2527_v61 = vadd.f32 %v2526_v3, %v2525_v40  ;;  %v2607_v53 = vmul.f32 %v2601_v46, %v4527_v22  ;;  %v2641_v46 = vld [vmem:[%s5058_s5] sm:$0xff] }
 0x350   :  { %v2580_v23 = vsel %vm121_vm0, %v2575_v4, 0.0  ;;  %2557 = vadd.xlane.f32.xlu0 %v2556_v6  ;;  %v2610_v5 = vadd.f32 %v2609_v0, %v4490_v43  ;;  %v2578_v62 = vmul.f32 %v2572_v59, %v4527_v22  ;;  %v2606_v49 = vmul.f32 %v2600_v30, %v4438_v15  ;;  %v4653_v22 = vpop.f32.mrb[56].mxu1  ;;  %v2161_v59 = vld [vmem:[%s5057_s4 + $0x58] sm:$0xff] }
 0x351   :  { %v2581_v55 = vadd.f32 %v2580_v23, %v4450_v19  ;;  %2528 = vadd.xlane.f32.xlu1 %v2527_v61  ;;  %v2577_v20 = vmul.f32 %v2571_v26, %v4438_v15  ;;  %v2613_v11 = vsel %vm121_vm0, %v2607_v53, 0.0  ;;  %v2159_v19 = vld [vmem:[%s5057_s4 + $0x48] sm:$0xff]  ;;  %v2160_v53 = vld [vmem:[%s5057_s4 + $0x50] sm:$0xff]  ;;  %v3691_v30 = vmov 1  }
 0x352   :  { %v2611_v8 = vadd.f32 %v2610_v5, %v2605_v34  ;;  %v2584_v13 = vsel %vm121_vm0, %v2578_v62, 0.0  ;;  %v4655_v34 = vpop.f32.mrb[57].mxu1  ;;  %v2158_v5 = vld [vmem:[%s5057_s4 + $0x40] sm:$0xff]  ;;  %v2642_v26 = vld [vmem:[%s5058_s5 + $0x8] sm:$0xff]  ;;  %v2685_v6 = vmul.f32 1.442695, %v4408_v50 }
 0x353   :  { %v2582_v25 = vadd.f32 %v2581_v55, %v2576_v12  ;;  %v4657_v55 = vpop.f32.mrb[58].mxu1  ;;  %v2687_v40 = vmul.f32 1.442695, %v4414_v60  ;;  %v2691_v12 = vmul.f32 1.442695, %v4423_v63 }
 0x354   :  { %v2612_v37 = vadd.f32 %v2611_v8, %v2606_v49  ;;  %v4662_v15 = vpop.f32.mrb[59].mxu1  ;;  %v2693_v3 = vmul.f32 1.442695, %v4436_v14  ;;  %3609 = vpow2.f32 %v2685_v6  ;;  %v2703_v0 = vmul.f32 1.442695, %v4453_v36 }
 0x355   :  { %v2583_v4 = vadd.f32 %v2582_v25, %v2577_v20  ;;  %3611 = vpow2.f32 %v2687_v40  ;;  %v2705_v61 = vmul.f32 1.442695, %v4458_v9  ;;  %v2709_v49 = vmul.f32 1.442695, %v4467_v2 }
 0x356   :  { %v2614_v43 = vadd.f32 %v2613_v11, %v2612_v37  ;;  %3613 = vpow2.f32 %v2691_v12  ;;  %v2711_v50 = vmul.f32 1.442695, %v4476_v27  ;;  %v2707_v63 = vmul.f32 1.442695, %v4583_v31 }
 0x357   :  { %v2585_v18 = vadd.f32 %v2584_v13, %v2583_v4  ;;  %3615 = vpow2.f32 %v2693_v3  ;;  %v2689_v25 = vmul.f32 1.442695, %v4586_v48  ;;  %v2713_v31 = vmul.f32 1.442695, %v4600_v45 }
 0x358   :  { %2615 = vadd.xlane.f32.xlu1 %v2614_v43  ;;  %3617 = vpow2.f32 %v2703_v0  ;;  %v2629_v6 = vmul.f32 16.0, %v4394_v56  ;;  %v2630_v40 = vmul.f32 16.0, %v4400_v57  ;;  %v2631_v12 = vmul.f32 16.0, %v4511_v58 }
 0x359   :  { %2586 = vadd.xlane.f32.xlu0 %v2585_v18  ;;  %3619 = vpow2.f32 %v2705_v61  ;;  %v5070_v57 = vfloor.f32 %v4333_v17  ;;  %v5072_v17 = vfloor.f32 %v4488_v42 }
 0x35a   :  { %3621 = vpow2.f32 %v2709_v49 }
 0x35b   :  { %3623 = vpow2.f32 %v2711_v50  ;;  %v2635_v58 = vmul.f32 16.0, %v5070_v57  ;;  %v2637_v50 = vmul.f32 16.0, %v5072_v17 }
 0x35c   :  { %3625 = vpow2.f32 %v2707_v63 }
 0x35d   :  { %3627 = vpow2.f32 %v2689_v25 }
 0x35e   :  { %v4686_v18 = vpop.eup %3609  ;;  %3629 = vpow2.f32 %v2713_v31 }
 0x369   :  { %2209 = vperm.xlu1 %3556, %v2159_v19   ;;  %v4689_v19 = vpop.eup %3611 }
 0x36d   :  { %2214 = vperm.xlu1 %3556, %v2160_v53   ;;  %v2695_v53 = vmul.f32 1.442695, %v4610_v1 }
 0x36f   :  { %2204 = vperm.xlu0 %3555, %v2158_v5   ;;  %3631 = vpow2.f32 %v2695_v53 }
 0x371   :  { %2645 = vperm.xlu1 %3556, %v2641_v46  }
 0x373   :  { %2219 = vperm.xlu0 %3555, %v2161_v59   ;;  %v4692_v59 = vpop.eup %3613 }
 0x374   :  { %v4697_v3 = vpop.eup %3615 }
 0x375   :  { %3557 = vset.pattern.permute.xlu1 %v3691_v30  ;;  %v4705_v61 = vpop.eup %3617 }
 0x376   :  { %2654 = vperm.xlu1 %3557, %v2641_v46   ;;  %v4712_v49 = vpop.eup %3619 }
 0x377   :  { %2650 = vperm.xlu0 %3555, %v2642_v26  }
 0x37b   :  { %3558 = vset.pattern.permute.xlu0 %v3691_v30 }
 0x37c   :  { %2658 = vperm.xlu0 %3558, %v2642_v26  }
 0x3dd   :  { %v2558_v23 = vpop.xlane.xlu0 %2557 }
 0x3de   :  { %v2559_v62 = vrot.slane %v2558_v23, 4  ;;  %v2529_v8 = vpop.xlane.xlu1 %2528 }
 0x3df   :  { %v2530_v20 = vrot.slane %v2529_v8, 4 }
 0x3e0   :  { %v2560_v60 = vadd.f32 %v2559_v62, %v2558_v23 }
 0x3e1   :  { %v2531_v36 = vadd.f32 %v2530_v20, %v2529_v8 }
 0x3e2   :  { %v2561_v14 = vrot.slane %v2560_v60, 2 }
 0x3e3   :  { %v2532_v9 = vrot.slane %v2531_v36, 2 }
 0x3e4   :  { %v2562_v37 = vadd.f32 %v2561_v14, %v2560_v60  ;;  %v4726_v60 = vpop.eup %3621  ;;  %v4733_v14 = vadd.f32 7.5, %v2629_v6 }
 0x3e5   :  { %v2616_v2 = vpop.xlane.xlu1 %2615  ;;  %v2533_v27 = vadd.f32 %v2532_v9, %v2531_v36  ;;  %v4735_v36 = vadd.f32 7.5, %v2630_v40  ;;  %v4739_v42 = vpop.eup %3623 }
 0x3e6   :  { %v2587_v4 = vpop.xlane.xlu0 %2586  ;;  %v2617_v11 = vrot.slane %v2616_v2, 4  ;;  %v2563_v43 = vrot.slane %v2562_v37, 1 }
 0x3e7   :  { %v2588_v13 = vrot.slane %v2587_v4, 4  ;;  %v2534_v46 = vrot.slane %v2533_v27, 1 }
 0x3e8   :  { %v2618_v48 = vadd.f32 %v2617_v11, %v2616_v2  ;;  %v2564_v30 = vadd.f32 %v2563_v43, %v2562_v37 }
 0x3e9   :  { %v2589_v5 = vadd.f32 %v2588_v13, %v2587_v4  ;;  %v2210_v26 = vpop.permute.xlu1 %2209  ;;  %v2535_v56 = vadd.f32 %v2534_v46, %v2533_v27  ;;  %v4745_v4 = vpop.eup %3625 }
 0x3ea   :  { %v2619_v45 = vrot.slane %v2618_v48, 2  ;;  %v4700_v23 = vadd.f32 %v4496_v44, %v2210_v26  ;;  %v4703_v1 = vadd.f32 %v4498_v39, %v2210_v26  ;;  %v4708_v62 = vadd.f32 %v4662_v15, %v2210_v26 }
 0x3eb   :  { %v2590_v0 = vrot.slane %v2589_v5, 2  ;;  %v5071_v15 = vfloor.f32 %v4340_v29  ;;  %3535 = vpush %v2535_v56  ;;  %v4737_v29 = vadd.f32 7.5, %v2631_v12 }
 0x3ec   :  { %2472 = vst [vmem:[%s5059_s6 + $0xd8] sm:$0xff] %v4700_v23  ;;  %2473 = vst [vmem:[%s5059_s6 + $0xe0] sm:$0xff] %v4703_v1  ;;  %v2620_v39 = vadd.f32 %v2619_v45, %v2618_v48 }
 0x3ed   :  { %v2591_v44 = vadd.f32 %v2590_v0, %v2589_v5  ;;  %v2636_v8 = vmul.f32 16.0, %v5071_v15  ;;  %2474 = vst.msk [vmem:[%s5059_s6 + $0xe8] sm:$0xff] %vm121_vm0, %v4708_v62  ;;  %v2215_v20 = vpop.permute.xlu1 %2214 }
 0x3ee   :  { %v2205_v63 = vpop.permute.xlu0 %2204  ;;  %3537 = vpush %v2564_v30  ;;  %v2356_v25 = vadd.f32 %v4503_v51, %v2215_v20  ;;  %v2358_v9 = vadd.f32 %v4505_v32, %v2215_v20  ;;  %v2439_v37 = vadd.f32 %v4653_v22, %v2215_v20  ;;  %v2621_v43 = vrot.slane %v2620_v39, 1  ;;  %v3628_v22 = vpop.eup %3627 }
 0x3ef   :  { %v2346_v2 = vadd.f32 %v4492_v21, %v2205_v63  ;;  %v2348_v11 = vadd.f32 %v4494_v35, %v2205_v63  ;;  %v2431_v13 = vadd.f32 %v4655_v34, %v2205_v63  ;;  %v2592_v27 = vrot.slane %v2591_v44, 1 }
 0x3f0   :  { %2475 = vst [vmem:[%s5059_s6 + $0xf0] sm:$0xff] %v2356_v25  ;;  %2476 = vst [vmem:[%s5059_s6 + $0xf8] sm:$0xff] %v2358_v9  ;;  %v4762_v35 = vadd.f32 7.5, %v2635_v58  ;;  %v4764_v51 = vadd.f32 7.5, %v2636_v8  ;;  %v4766_v32 = vadd.f32 7.5, %v2637_v50  ;;  %v2622_v5 = vadd.f32 %v2621_v43, %v2620_v39 }
 0x3f1   :  { %2477 = vst.msk [vmem:[%s5059_s6 + $0x100] sm:$0xff] %vm121_vm0, %v2439_v37  ;;  %2469 = vst [vmem:[%s5059_s6 + $0xc0] sm:$0xff] %v2346_v2  ;;  %v2877_v21 = vsub.f32 %v2356_v25, %v2346_v2  ;;  %v2878_v34 = vsub.f32 %v2358_v9, %v2348_v11  ;;  %v2879_v31 = vsub.f32 %v2439_v37, %v2431_v13  ;;  %v2646_v53 = vpop.permute.xlu1 %2645 }
 0x3f2   :  { %2470 = vst [vmem:[%s5059_s6 + $0xc8] sm:$0xff] %v2348_v11  ;;  %2471 = vst.msk [vmem:[%s5059_s6 + $0xd0] sm:$0xff] %vm121_vm0, %v2431_v13  ;;  %v2593_v48 = vadd.f32 %v2592_v27, %v2591_v44  ;;  %v2661_v26 = vmul.f32 %v2646_v53, %v4331_v10  ;;  %v2662_v30 = vmul.f32 %v2646_v53, %v4338_v28  ;;  %v2220_v56 = vpop.permute.xlu0 %2219  ;;  %v4783_v10 = vpop.eup %3629 }
 0x3f3   :  { %v2883_v46 = vmul.f32 1.442695, %v2877_v21  ;;  %v2663_v6 = vmul.f32 %v2646_v53, %v4530_v24  ;;  %v2885_v40 = vmul.f32 1.442695, %v2878_v34  ;;  %v2887_v12 = vmul.f32 1.442695, %v2879_v31  ;;  %v4806_v17 = vpop.eup %3631 }
 0x3f4   :  { %v2697_v45 = vmul.f32 %v4686_v18, %v2646_v53  ;;  %v2698_v0 = vmul.f32 %v4689_v19, %v2646_v53  ;;  %3539 = vpush %v2593_v48  ;;  %v2667_v57 = vadd.f32 %v2661_v26, %v4733_v14  ;;  %v2668_v58 = vadd.f32 %v2662_v30, %v4735_v36 }
 0x3f5   :  { %3633 = vpow2.f32 %v2883_v46  ;;  %v2669_v44 = vadd.f32 %v2663_v6, %v4737_v29  ;;  %3541 = vpush %v2622_v5  ;;  %v2699_v28 = vmul.f32 %v3628_v22, %v2646_v53  ;;  %v4791_v19 = vpop.permute.xlu1 %2654  ;;  %v2360_v39 = vadd.f32 %v4507_v54, %v2220_v56 }
 0x3f6   :  { %3635 = vpow2.f32 %v2885_v40  ;;  %2733 = vst [vmem:[%s5059_s6 + $0x180] sm:$0xff] %v2697_v45  ;;  %2734 = vst [vmem:[%s5059_s6 + $0x188] sm:$0xff] %v2698_v0  ;;  %v3127_v24 = vadd.f32 -1.0, %v2697_v45  ;;  %v3128_v18 = vadd.f32 -1.0, %v2698_v0  ;;  %v2362_v15 = vadd.f32 %v4509_v33, %v2220_v56 }
 0x3f7   :  { %3637 = vpow2.f32 %v2887_v12  ;;  %2721 = vst [vmem:[%s5059_s6 + $0x120] sm:$0xff] %v2667_v57  ;;  %2722 = vst [vmem:[%s5059_s6 + $0x128] sm:$0xff] %v2668_v58  ;;  %v2442_v8 = vadd.f32 %v4657_v55, %v2220_v56  ;;  %v3129_v50 = vadd.f32 -1.0, %v2699_v28  ;;  %v2673_v25 = vmul.f32 %v4791_v19, %v4371_v47 }
 0x3f8   :  { %2723 = vst.msk [vmem:[%s5059_s6 + $0x130] sm:$0xff] %vm121_vm0, %v2669_v44  ;;  %2735 = vst.msk [vmem:[%s5059_s6 + $0x190] sm:$0xff] %vm121_vm0, %v2699_v28  ;;  %v2751_v20 = vmul.f32 0.5, %v3127_v24  ;;  %v2752_v63 = vmul.f32 0.5, %v3128_v18  ;;  %v2880_v54 = vsub.f32 %v2360_v39, %v4700_v23  ;;  %v2881_v33 = vsub.f32 %v2362_v15, %v4703_v1 }
 0x3f9   :  { %2478 = vst [vmem:[%s5059_s6 + $0x108] sm:$0xff] %v2360_v39  ;;  %2479 = vst [vmem:[%s5059_s6 + $0x110] sm:$0xff] %v2362_v15  ;;  %v2882_v55 = vsub.f32 %v2442_v8, %v4708_v62  ;;  %v2674_v47 = vmul.f32 %v4791_v19, %v4378_v52  ;;  %v2753_v9 = vmul.f32 0.5, %v3129_v50  ;;  %v2675_v11 = vmul.f32 %v4791_v19, %v4523_v16 }
 0x3fa   :  { %2480 = vst.msk [vmem:[%s5059_s6 + $0x118] sm:$0xff] %vm121_vm0, %v2442_v8  ;;  %v2757_v37 = vsub.f32 %v2667_v57, %v2751_v20  ;;  %v2758_v2 = vsub.f32 %v2668_v58, %v2752_v63  ;;  %v2889_v13 = vmul.f32 1.442695, %v2880_v54  ;;  %v2891_v27 = vmul.f32 1.442695, %v2881_v33 }
 0x3fb   :  { %v2893_v43 = vmul.f32 1.442695, %v2882_v55  ;;  %v4832_v21 = vadd.f32 %v2673_v25, %v4762_v35  ;;  %v2759_v23 = vsub.f32 %v2669_v44, %v2753_v9  ;;  %v2680_v52 = vadd.f32 %v2674_v47, %v4764_v51 }
 0x3fc   :  { %v2781_v22 = vadd.f32 %v2757_v37, %v2697_v45  ;;  %v2782_v1 = vadd.f32 %v2758_v2, %v2698_v0  ;;  %v2805_v34 = vmax.f32 %v2757_v37, 1.0  ;;  %v2806_v62 = vmax.f32 %v2758_v2, 1.0 }
 0x3fd   :  { %3639 = vpow2.f32 %v2889_v13  ;;  %v4836_v31 = vadd.f32 %v2675_v11, %v4766_v32  ;;  %2727 = vst [vmem:[%s5059_s6 + $0x150] sm:$0xff] %v4832_v21  ;;  %v2783_v16 = vadd.f32 %v2759_v23, %v2699_v28  ;;  %v2807_v5 = vmax.f32 %v2759_v23, 1.0  ;;  %2728 = vst [vmem:[%s5059_s6 + $0x158] sm:$0xff] %v2680_v52  ;;  %v2651_v28 = vpop.permute.xlu0 %2650 }
 0x3fe   :  { %v3139_v53 = vadd.f32 -1.0, %v2781_v22  ;;  %v3140_v48 = vadd.f32 -1.0, %v2782_v1  ;;  %v2811_v26 = vmin.f32 %v2805_v34, 255.0  ;;  %v2812_v30 = vmin.f32 %v2806_v62, 255.0 }
 0x3ff   :  { %v3634_v46 = vpop.eup %3633  ;;  %3641 = vpow2.f32 %v2891_v27  ;;  %v2715_v6 = vmul.f32 %v4705_v61, %v4791_v19  ;;  %2729 = vst.msk [vmem:[%s5059_s6 + $0x160] sm:$0xff] %vm121_vm0, %v4836_v31  ;;  %v3141_v45 = vadd.f32 -1.0, %v2783_v16  ;;  %v2813_v0 = vmin.f32 %v2807_v5, 255.0 }
 0x400   :  { %v3636_v40 = vpop.eup %3635  ;;  %v2895_v12 = vadd.f32 1.0, %v3634_v46  ;;  %v2841_v56 = vmax.f32 %v3139_v53, 2.0  ;;  %2817 = vst [vmem:[%s5059_s6 + $0x1e0] sm:$0xff] %v2811_v26  ;;  %2818 = vst [vmem:[%s5059_s6 + $0x1e8] sm:$0xff] %v2812_v30  ;;  %v2842_v61 = vmax.f32 %v3140_v48, 2.0  ;;  %3643 = vpow2.f32 %v2893_v43 }
 0x401   :  { %v3638_v57 = vpop.eup %3637  ;;  %v2896_v58 = vadd.f32 1.0, %v3636_v40  ;;  %v2716_v44 = vmul.f32 %v4712_v49, %v4791_v19  ;;  %2739 = vst [vmem:[%s5059_s6 + $0x1b0] sm:$0xff] %v2715_v6  ;;  %2819 = vst.msk [vmem:[%s5059_s6 + $0x1f0] sm:$0xff] %vm121_vm0, %v2813_v0  ;;  %v2843_v18 = vmax.f32 %v3141_v45, 2.0  ;;  %v2717_v8 = vmul.f32 %v4745_v4, %v4791_v19  ;;  %v2659_v5 = vpop.permute.xlu0 %2658 }
 0x402   :  { %v2897_v24 = vadd.f32 1.0, %v3638_v57  ;;  %3645 = vrcp.f32 %v2895_v12  ;;  %v2847_v39 = vmin.f32 %v2841_v56, 256.0  ;;  %v2848_v15 = vmin.f32 %v2842_v61, 256.0 }
 0x403   :  { %3647 = vrcp.f32 %v2896_v58  ;;  %2740 = vst [vmem:[%s5059_s6 + $0x1b8] sm:$0xff] %v2716_v44  ;;  %v3133_v49 = vadd.f32 -1.0, %v2715_v6  ;;  %v2849_v50 = vmin.f32 %v2843_v18, 256.0  ;;  %v3134_v20 = vadd.f32 -1.0, %v2716_v44  ;;  %2741 = vst.msk [vmem:[%s5059_s6 + $0x1c0] sm:$0xff] %vm121_vm0, %v2717_v8 }
 0x404   :  { %3649 = vrcp.f32 %v2897_v24  ;;  %2853 = vst [vmem:[%s5059_s6 + $0x240] sm:$0xff] %v2847_v39  ;;  %v2664_v63 = vmul.f32 %v2651_v28, %v4347_v41  ;;  %2854 = vst [vmem:[%s5059_s6 + $0x248] sm:$0xff] %v2848_v15  ;;  %v3135_v4 = vadd.f32 -1.0, %v2717_v8  ;;  %v2665_v25 = vmul.f32 %v2651_v28, %v4356_v7  ;;  %v5074_v15 = vld [vmem:[#allocation6_spill] sm:$0xff] }
 0x405   :  { %v2769_v19 = vmul.f32 0.5, %v3133_v49  ;;  %v2666_v54 = vmul.f32 %v2651_v28, %v4554_v38  ;;  %2855 = vst.msk [vmem:[%s5059_s6 + $0x250] sm:$0xff] %vm121_vm0, %v2849_v50  ;;  %v2770_v41 = vmul.f32 0.5, %v3134_v20  ;;  %v4891_v55 = vmul.f32 %v4692_v59, %v2651_v28  ;;  %v5075_v20 = vld [vmem:[#allocation7_spill] sm:$0xff] }
 0x406   :  { %v2670_v33 = vadd.f32 %v2664_v63, %v4733_v14  ;;  %v4894_v47 = vmul.f32 %v4697_v3, %v2651_v28  ;;  %v2771_v37 = vmul.f32 0.5, %v3135_v4  ;;  %v2671_v38 = vadd.f32 %v2665_v25, %v4735_v36 }
 0x407   :  { %v3640_v9 = vpop.eup %3639  ;;  %v2775_v7 = vsub.f32 %v4832_v21, %v2769_v19  ;;  %v2672_v2 = vadd.f32 %v2666_v54, %v4737_v29  ;;  %v2776_v13 = vsub.f32 %v2680_v52, %v2770_v41  ;;  %v4900_v27 = vmul.f32 %v4806_v17, %v2651_v28  ;;  %2736 = vst [vmem:[%s5059_s6 + $0x198] sm:$0xff] %v4891_v55 }
 0x408   :  { %v2898_v11 = vadd.f32 1.0, %v3640_v9  ;;  %2724 = vst [vmem:[%s5059_s6 + $0x138] sm:$0xff] %v2670_v33  ;;  %2737 = vst [vmem:[%s5059_s6 + $0x1a0] sm:$0xff] %v4894_v47  ;;  %v3130_v59 = vadd.f32 -1.0, %v4891_v55  ;;  %v2777_v14 = vsub.f32 %v4836_v31, %v2771_v37  ;;  %v3131_v17 = vadd.f32 -1.0, %v4894_v47 }
 0x409   :  { %v3642_v3 = vpop.eup %3641  ;;  %v2793_v36 = vadd.f32 %v2775_v7, %v2715_v6  ;;  %v2823_v29 = vmax.f32 %v2775_v7, 1.0  ;;  %2725 = vst [vmem:[%s5059_s6 + $0x140] sm:$0xff] %v2671_v38  ;;  %2726 = vst.msk [vmem:[%s5059_s6 + $0x148] sm:$0xff] %vm121_vm0, %v2672_v2  ;;  %v2794_v21 = vadd.f32 %v2776_v13, %v2716_v44  ;;  %v2824_v23 = vmax.f32 %v2776_v13, 1.0  ;;  %v5073_v44 = vld [vmem:[#allocation5_spill] sm:$0xff] }
 0x40a   :  { %v2899_v43 = vadd.f32 1.0, %v3642_v3  ;;  %3651 = vrcp.f32 %v2898_v11  ;;  %2738 = vst.msk [vmem:[%s5059_s6 + $0x1a8] sm:$0xff] %vm121_vm0, %v4900_v27  ;;  %v3644_v22 = vpop.eup %3643  ;;  %v2795_v1 = vadd.f32 %v2777_v14, %v2717_v8  ;;  %v2825_v62 = vmax.f32 %v2777_v14, 1.0 }
 0x40b   :  { %v3145_v34 = vadd.f32 -1.0, %v2793_v36  ;;  %v2829_v52 = vmin.f32 %v2823_v29, 255.0  ;;  %v2900_v16 = vadd.f32 1.0, %v3644_v22  ;;  %v3146_v53 = vadd.f32 -1.0, %v2794_v21 }
 0x40c   :  { %v3646_v31 = vpop.eup %3645  ;;  %3653 = vrcp.f32 %v2899_v43  ;;  %v2830_v48 = vmin.f32 %v2824_v23, 255.0  ;;  %v3147_v26 = vadd.f32 -1.0, %v2795_v1  ;;  %v2831_v30 = vmin.f32 %v2825_v62, 255.0 }
 0x40d   :  { %v3648_v46 = vpop.eup %3647  ;;  %2907 = vst [vmem:[%s5059_s6 + $0x2a0] sm:$0xff] %v3646_v31  ;;  %2835 = vst [vmem:[%s5059_s6 + $0x210] sm:$0xff] %v2829_v52  ;;  %v2859_v6 = vmax.f32 %v3145_v34, 2.0  ;;  %v3132_v40 = vadd.f32 -1.0, %v4900_v27  ;;  %3655 = vrcp.f32 %v2900_v16  ;;  %v2860_v45 = vmax.f32 %v3146_v53, 2.0 }
 0x40e   :  { %v3650_v12 = vpop.eup %3649  ;;  %2908 = vst [vmem:[%s5059_s6 + $0x2a8] sm:$0xff] %v3648_v46  ;;  %2836 = vst [vmem:[%s5059_s6 + $0x218] sm:$0xff] %v2830_v48  ;;  %v2754_v0 = vmul.f32 0.5, %v3130_v59  ;;  %v2755_v56 = vmul.f32 0.5, %v3131_v17  ;;  %v2861_v57 = vmax.f32 %v3147_v26, 2.0  ;;  %v2676_v28 = vmul.f32 %v2659_v5, %v5073_v44 }
 0x40f   :  { %2909 = vst.msk [vmem:[%s5059_s6 + $0x2b0] sm:$0xff] %vm121_vm0, %v3650_v12  ;;  %2837 = vst.msk [vmem:[%s5059_s6 + $0x220] sm:$0xff] %vm121_vm0, %v2831_v30  ;;  %v2865_v58 = vmin.f32 %v2859_v6, 256.0  ;;  %v2756_v61 = vmul.f32 0.5, %v3132_v40  ;;  %v2866_v24 = vmin.f32 %v2860_v45, 256.0  ;;  %v2677_v8 = vmul.f32 %v2659_v5, %v5074_v15 }
 0x410   :  { %v2760_v18 = vsub.f32 %v2670_v33, %v2754_v0  ;;  %v2761_v39 = vsub.f32 %v2671_v38, %v2755_v56  ;;  %v2867_v49 = vmin.f32 %v2861_v57, 256.0  ;;  %v2678_v63 = vmul.f32 %v2659_v5, %v5075_v20 }
 0x411   :  { %2871 = vst [vmem:[%s5059_s6 + $0x270] sm:$0xff] %v2865_v58  ;;  %v2762_v50 = vsub.f32 %v2672_v2, %v2756_v61  ;;  %v2682_v4 = vadd.f32 %v2676_v28, %v4762_v35  ;;  %2872 = vst [vmem:[%s5059_s6 + $0x278] sm:$0xff] %v2866_v24  ;;  %v2683_v35 = vadd.f32 %v2677_v8, %v4764_v51 }
 0x412   :  { %v2784_v19 = vadd.f32 %v2760_v18, %v4891_v55  ;;  %v2785_v25 = vadd.f32 %v2761_v39, %v4894_v47  ;;  %v2808_v54 = vmax.f32 %v2760_v18, 1.0  ;;  %v2809_v41 = vmax.f32 %v2761_v39, 1.0  ;;  %2873 = vst.msk [vmem:[%s5059_s6 + $0x280] sm:$0xff] %vm121_vm0, %v2867_v49 }
 0x413   :  { %v2786_v33 = vadd.f32 %v2762_v50, %v4900_v27  ;;  %v2810_v9 = vmax.f32 %v2762_v50, 1.0  ;;  %v2684_v37 = vadd.f32 %v2678_v63, %v4766_v32  ;;  %2730 = vst [vmem:[%s5059_s6 + $0x168] sm:$0xff] %v2682_v4  ;;  %v2718_v27 = vmul.f32 %v4726_v60, %v2659_v5  ;;  %2731 = vst [vmem:[%s5059_s6 + $0x170] sm:$0xff] %v2683_v35 }
 0x414   :  { %v3652_v55 = vpop.eup %3651  ;;  %v3142_v47 = vadd.f32 -1.0, %v2784_v19  ;;  %v3143_v7 = vadd.f32 -1.0, %v2785_v25  ;;  %v2814_v38 = vmin.f32 %v2808_v54, 255.0  ;;  %v2815_v2 = vmin.f32 %v2809_v41, 255.0 }
 0x415   :  { %2910 = vst [vmem:[%s5059_s6 + $0x2b8] sm:$0xff] %v3652_v55  ;;  %v3144_v11 = vadd.f32 -1.0, %v2786_v33  ;;  %v2816_v13 = vmin.f32 %v2810_v9, 255.0  ;;  %v2719_v51 = vmul.f32 %v4739_v42, %v2659_v5  ;;  %2732 = vst.msk [vmem:[%s5059_s6 + $0x178] sm:$0xff] %vm121_vm0, %v2684_v37  ;;  %v2720_v59 = vmul.f32 %v4783_v10, %v2659_v5 }
 0x416   :  { %v3654_v32 = vpop.eup %3653  ;;  %2820 = vst [vmem:[%s5059_s6 + $0x1f8] sm:$0xff] %v2814_v38  ;;  %2821 = vst [vmem:[%s5059_s6 + $0x200] sm:$0xff] %v2815_v2  ;;  %v2844_v60 = vmax.f32 %v3142_v47, 2.0  ;;  %v2845_v42 = vmax.f32 %v3143_v7, 2.0  ;;  %v3136_v14 = vadd.f32 -1.0, %v2718_v27 }
 0x417   :  { %2911 = vst [vmem:[%s5059_s6 + $0x2c0] sm:$0xff] %v3654_v32  ;;  %2822 = vst.msk [vmem:[%s5059_s6 + $0x208] sm:$0xff] %vm121_vm0, %v2816_v13  ;;  %v2846_v3 = vmax.f32 %v3144_v11, 2.0  ;;  %v3137_v10 = vadd.f32 -1.0, %v2719_v51  ;;  %v3656_v36 = vpop.eup %3655  ;;  %v3138_v43 = vadd.f32 -1.0, %v2720_v59 }
 0x418   :  { %2742 = vst [vmem:[%s5059_s6 + $0x1c8] sm:$0xff] %v2718_v27  ;;  %2743 = vst [vmem:[%s5059_s6 + $0x1d0] sm:$0xff] %v2719_v51  ;;  %v2850_v29 = vmin.f32 %v2844_v60, 256.0  ;;  %v2851_v17 = vmin.f32 %v2845_v42, 256.0  ;;  %v2772_v23 = vmul.f32 0.5, %v3136_v14 }
 0x419   :  { %2744 = vst.msk [vmem:[%s5059_s6 + $0x1d8] sm:$0xff] %vm121_vm0, %v2720_v59  ;;  %2912 = vst.msk [vmem:[%s5059_s6 + $0x2c8] sm:$0xff] %vm121_vm0, %v3656_v36  ;;  %v2852_v21 = vmin.f32 %v2846_v3, 256.0  ;;  %v2773_v22 = vmul.f32 0.5, %v3137_v10  ;;  %v2774_v1 = vmul.f32 0.5, %v3138_v43 }
 0x41a   :  { %2856 = vst [vmem:[%s5059_s6 + $0x258] sm:$0xff] %v2850_v29  ;;  %2857 = vst [vmem:[%s5059_s6 + $0x260] sm:$0xff] %v2851_v17  ;;  %v2778_v34 = vsub.f32 %v2682_v4, %v2772_v23 }
 0x41b   :  { %2858 = vst.msk [vmem:[%s5059_s6 + $0x268] sm:$0xff] %vm121_vm0, %v2852_v21  ;;  %v2779_v62 = vsub.f32 %v2683_v35, %v2773_v22  ;;  %v2780_v52 = vsub.f32 %v2684_v37, %v2774_v1 }
 0x41c   :  { %v2796_v31 = vadd.f32 %v2778_v34, %v2718_v27  ;;  %v2826_v53 = vmax.f32 %v2778_v34, 1.0  ;;  %s3536_s19 = spop %3535 }
 0x41d   :  { %v2797_v16 = vadd.f32 %v2779_v62, %v2719_v51  ;;  %v2827_v48 = vmax.f32 %v2779_v62, 1.0  ;;  %v2798_v5 = vadd.f32 %v2780_v52, %v2720_v59  ;;  %v2828_v46 = vmax.f32 %v2780_v52, 1.0 }
 0x41e   :  { %v3148_v26 = vadd.f32 -1.0, %v2796_v31  ;;  %v2832_v6 = vmin.f32 %v2826_v53, 255.0 }
 0x41f   :  { %v3149_v30 = vadd.f32 -1.0, %v2797_v16  ;;  %v2833_v40 = vmin.f32 %v2827_v48, 255.0  ;;  %v3150_v12 = vadd.f32 -1.0, %v2798_v5  ;;  %v2834_v45 = vmin.f32 %v2828_v46, 255.0  ;;  %s3538_s24 = spop %3537 }
 0x420   :  { %2838 = vst [vmem:[%s5059_s6 + $0x228] sm:$0xff] %v2832_v6  ;;  %v2862_v0 = vmax.f32 %v3148_v26, 2.0  ;;  %s2566_s26 = sadd.f32 %s3538_s24, %s3536_s19 }
 0x421   :  { %2839 = vst [vmem:[%s5059_s6 + $0x230] sm:$0xff] %v2833_v40  ;;  %v2863_v56 = vmax.f32 %v3149_v30, 2.0  ;;  %2840 = vst.msk [vmem:[%s5059_s6 + $0x238] sm:$0xff] %vm121_vm0, %v2834_v45  ;;  %v2864_v57 = vmax.f32 %v3150_v12, 2.0 }
 0x422   :  { %v2868_v58 = vmin.f32 %v2862_v0, 256.0 }
 0x423   :  { %v2869_v61 = vmin.f32 %v2863_v56, 256.0  ;;  %v2870_v44 = vmin.f32 %v2864_v57, 256.0 }
 0x424   :  { %2874 = vst [vmem:[%s5059_s6 + $0x288] sm:$0xff] %v2868_v58 }
 0x425   :  { %2875 = vst [vmem:[%s5059_s6 + $0x290] sm:$0xff] %v2869_v61  ;;  %s3540_s8 = spop %3539  ;;  %2876 = vst.msk [vmem:[%s5059_s6 + $0x298] sm:$0xff] %vm121_vm0, %v2870_v44 }
 0x426   :  { %s2595_s11 = sadd.f32 %s3540_s8, %s2566_s26  ;;  %s3542_s12 = spop %3541 }
 0x428   :  { %s2624_s13 = sadd.f32 %s3542_s12, %s2595_s11 }
 0x42a   :  { %s2625_s15 = smul.f32 2.5e-05, %s2624_s13 }
 0x42c   :  { %v2626_v28 = vstv %s2625_s15 }
 0x42d   :  { %2628 = vst.msk [vmem:[#allocation2] sm:$0x1] %vm2627_vm13, %v2626_v28 }
 0x42e   :  { %3668 = shalt.err (!%p3665_p4)
}
 0x42f   :  { %s3669_s4 = scalar_lea.hbm %s5060_s7, 16 }
 0x430   :  { %p3670_p5 = scmp.ne.s32.totalorder %s5060_s7, %s3669_s4  ;;  %p3673_p6 = scmp.lt.u32.totalorder %s3669_s4, %s5060_s7 }
 0x432   :  { %p3675_p7 = pnand %p3673_p6, %p3670_p5 }
 0x434   :  { %3678 = shalt.err (!%p3675_p7)
}
 0x435   :  { %2924 = dma.vmem_to_hbm [thread:$0]  %s2922_s14, 16, %s5060_s7, [#allocation3]  }
 0x436   :  { %3679 = dma.done.wait [#allocation3], 16  }
 0x437   :  { %3680 = vsyncadd [#allocation3], 4294967280 }
 0x438   :  { %2930 = vsyncpa [#allocation3], 1 }

</bundles_post_ra>
